<compile_context>
chip_gen: v6e
topology: v6e:2x2x1
jax: 0.10.0
libtpu: 0.0.40
codegen_flags: <defaults>
</compile_context>

<pallas_src>
import jax
import jax.numpy as jnp
import numpy as np
from jax.experimental import pallas as pl
from jax.experimental.pallas import tpu as pltpu

# ----------------------------- small, TPU-friendly sizes -----------------------------
B = 8                          # batch
V1, V2, V3 = 256, 384, 512     # stand-ins for vocab_size1/2/3 = 1102/1611/1798
VSEG = 512                     # per-segment padded lane width (multiple of 128)
H = 128                        # t_hidden_size (stand-in for 800)
K = 25                         # num_topics (kept exact)
E = 128                        # emsize / rho_size (stand-in for 768)

# advisory cost estimate (static)
_FLOPS = (2 * B * H * (V1 + V2 + V3) + 6 * B * H * H + 6 * B * H * 2 * K
          + 6 * K * E * VSEG + 6 * B * K * VSEG)
_TRANS = 2 * B * K + 3 * K * VSEG + 3 * B * VSEG
_BYTES = (2 * ((V1 + V2 + V3) * H + 3 * H * H + 3 * H * 2 * K + K * E + 3 * E * VSEG)
          + 2 * B * (V1 + V2 + V3) + 4 * 3 * B * VSEG + 4 * 3 * VSEG
          + 4 * (B * K + 3 * K * VSEG + 3 * B * VSEG + 4))


# =====================================================================================
# Fused multiETM kernel.  grid=(3,) over vocab segments.  Encoder runs at seg==0 only;
# theta carried in VMEM scratch.  Decoder (logit matmul + masked softmax + preds +
# recon) runs per segment on its own rho / bows / beta / preds block.
# =====================================================================================
def multietm_kernel(nb1, nb2, nb3, bows_seg,
                    w11, b11, w12, b12,
                    w21, b21, w22, b22,
                    w31, b31, w32, b32,
                    wh1, wh2, wh3, b_head,
                    alphas, rho_seg, segmask,
                    theta_o, beta_o, preds_o, loss_o,
                    theta_sc):
    f32 = jnp.float32
    bf16 = jnp.bfloat16
    seg = pl.program_id(0)

    # ---------------- encoder: run once at the first grid step ----------------------
    @pl.when(seg == 0)
    def _encode():
        def mlp(x_ref, wa, ba, wb, bb):
            h = jnp.dot(x_ref[...], wa[...], preferred_element_type=f32) + ba[...]
            h = jnp.maximum(h, 0.0)
            h = jnp.dot(h.astype(bf16), wb[...], preferred_element_type=f32) + bb[...]
            return jnp.maximum(h, 0.0)

        h1 = mlp(nb1, w11, b11, w12, b12)          # (B, H) f32
        h2 = mlp(nb2, w21, b21, w22, b22)
        h3 = mlp(nb3, w31, b31, w32, b32)

        # mu/logsigma head as three accumulated dots (no (B,3H) concat)
        head = (jnp.dot(h1.astype(bf16), wh1[...], preferred_element_type=f32)
                + jnp.dot(h2.astype(bf16), wh2[...], preferred_element_type=f32)
                + jnp.dot(h3.astype(bf16), wh3[...], preferred_element_type=f32)
                + b_head[...])                     # (B, 2K)
        mu = head[:, 0:K]
        ls = head[:, K:2 * K]

        # KL divergence (mean over batch) -> scalar
        kl = -0.5 * jnp.sum(1.0 + ls - mu * mu - jnp.exp(ls)) / mu.shape[0]
        loss_o[3] = kl

        # eval-mode reparameterize -> z = mu ; theta = softmax(z) (EXACT divide)
        zmax = jnp.max(mu, axis=1, keepdims=True)
        ez = jnp.exp(mu - zmax)
        theta = ez / jnp.sum(ez, axis=1, keepdims=True)
        theta_sc[...] = theta
        theta_o[...] = theta

    # ---------------- decoder: one vocab segment per grid step ----------------------
    # bf16 x bf16 MXU matmul, f32 accumulation (no f32 upcast of rho).
    logit = jnp.dot(alphas[...], rho_seg[0], preferred_element_type=f32)   # (K, VSEG)
    logit = logit + segmask[0]          # padded columns forced to -1e30

    m = jnp.max(logit, axis=1, keepdims=True)
    e = jnp.exp(logit - m)
    p = e / jnp.sum(e, axis=1, keepdims=True)      # (K, VSEG), exact softmax
    beta_o[0] = p                                  # lane-dense (K, VSEG) store

    theta = theta_sc[...]                          # (B, K)
    res = jnp.dot(theta, p, preferred_element_type=f32)                    # (B, VSEG)
    preds = jnp.log(res + 1e-6)
    preds_o[0] = preds

    # reconstruction loss for this segment (padded bows are zero)
    recon = -jnp.sum(preds * bows_seg[0]) * (1.0 / B)
    loss_o[seg] = recon


# =====================================================================================
# Wrapper: one pallas_call with grid=(3,); lane-dense outputs split/transposed in XLA.
# =====================================================================================
def _full_spec(shape):
    nd = len(shape)
    return pl.BlockSpec(tuple(shape), lambda i, _nd=nd: (0,) * _nd)


@jax.jit
def multietm_forward(bows1, nbows1, bows2, nbows2, bows3, nbows3,
                     enc_params, alphas, rho_seg, segmask):
    bf16 = jnp.bfloat16
    # normalized bows passed to the kernel in bf16 (halves their HBM bytes)
    nb1 = nbows1.astype(bf16)
    nb2 = nbows2.astype(bf16)
    nb3 = nbows3.astype(bf16)

    def pad_v(x, V):
        return jnp.pad(x, ((0, 0), (0, VSEG - V)))

    bows_seg = jnp.stack([pad_v(bows1, V1), pad_v(bows2, V2), pad_v(bows3, V3)],
                         axis=0)                                   # (3, B, VSEG) f32

    out_shapes = (
        jax.ShapeDtypeStruct((B, K), jnp.float32),         # theta
        jax.ShapeDtypeStruct((3, K, VSEG), jnp.float32),   # beta per segment (K, VSEG)
        jax.ShapeDtypeStruct((3, B, VSEG), jnp.float32),   # preds per segment
        jax.ShapeDtypeStruct((4,), jnp.float32),           # [recon1, recon2, recon3, kl]
    )

    seg3 = lambda blk: pl.BlockSpec(blk, lambda i: (i, 0, 0))
    in_specs = (
        [_full_spec((B, V1)), _full_spec((B, V2)), _full_spec((B, V3)),
         seg3((1, B, VSEG))]
        + [_full_spec(p.shape) for p in enc_params]
        + [_full_spec((K, E)), seg3((1, E, VSEG)), seg3((1, 1, VSEG))]
    )
    out_specs = (
        pl.BlockSpec((B, K), lambda i: (0, 0)),
        seg3((1, K, VSEG)),
        seg3((1, B, VSEG)),
        pl.BlockSpec(memory_space=pltpu.MemorySpace.SMEM),
    )

    theta, beta_seg, preds_seg, losses = pl.pallas_call(
        multietm_kernel,
        out_shape=out_shapes,
        grid=(3,),
        in_specs=in_specs,
        out_specs=out_specs,
        scratch_shapes=[pltpu.VMEM((B, K), jnp.float32)],
        compiler_params=pltpu.CompilerParams(
            dimension_semantics=("arbitrary",),          # theta scratch carried across segs
            vmem_limit_bytes=32 * 1024 * 1024),          # per-segment tiling keeps real
                                                         # sizes under this, incl. v7x
        cost_estimate=pl.CostEstimate(flops=_FLOPS, transcendentals=_TRANS,
                                      bytes_accessed=_BYTES),
    )(nb1, nb2, nb3, bows_seg, *enc_params, alphas, rho_seg, segmask)

    beta1 = beta_seg[0, :, :V1].T                # (V1, K) == PyTorch beta orientation
    beta2 = beta_seg[1, :, :V2].T
    beta3 = beta_seg[2, :, :V3].T
    preds1 = preds_seg[0, :, :V1]
    preds2 = preds_seg[1, :, :V2]
    preds3 = preds_seg[2, :, :V3]

    return (losses[0], losses[1], losses[2], losses[3],
            beta1, beta2, beta3, preds1, preds2, preds3, theta)


# =====================================================================================
# Parameter construction (deterministic, synthetic).  Weights / alphas / rho in bf16.
# =====================================================================================
def init_params(key):
    keys = jax.random.split(key, 32)
    it = iter(keys)
    bf16 = jnp.bfloat16

    def lin(kin, kout):
        w = (jax.random.normal(next(it), (kin, kout), jnp.float32)
             * (1.0 / np.sqrt(kin))).astype(bf16)
        b = jax.random.normal(next(it), (1, kout), jnp.float32) * 0.01
        return w, b

    w11, b11 = lin(V1, H); w12, b12 = lin(H, H)
    w21, b21 = lin(V2, H); w22, b22 = lin(H, H)
    w31, b31 = lin(V3, H); w32, b32 = lin(H, H)
    wmu, bmu = lin(3 * H, K)
    wls, bls = lin(3 * H, K)
    # head weights pre-split per encoder stream -> no in-kernel (B,3H) concat
    wh1 = jnp.concatenate([wmu[0:H], wls[0:H]], axis=1)            # (H, 2K) bf16
    wh2 = jnp.concatenate([wmu[H:2 * H], wls[H:2 * H]], axis=1)
    wh3 = jnp.concatenate([wmu[2 * H:3 * H], wls[2 * H:3 * H]], axis=1)
    b_head = jnp.concatenate([bmu, bls], axis=1)                   # (1, 2K) f32
    enc_params = (w11, b11, w12, b12, w21, b21, w22, b22,
                  w31, b31, w32, b32, wh1, wh2, wh3, b_head)

    alphas = jax.random.normal(next(it), (K, E), jnp.float32).astype(bf16)  # nn.Parameter(randn(25,768)), stored bf16

    def rho_pad(k, V):   # synthetic BERT embeddings, transposed + lane-padded
        r = jax.random.normal(k, (V, E), jnp.float32) * 0.6
        return jnp.pad(r.T, ((0, 0), (0, VSEG - V)))               # (E, VSEG)

    rho_seg = jnp.stack([rho_pad(next(it), V1), rho_pad(next(it), V2),
                         rho_pad(next(it), V3)], axis=0).astype(bf16)       # (3, E, VSEG)

    col = jnp.arange(VSEG, dtype=jnp.int32)[None, :]
    segmask = jnp.stack([jnp.where(col < V1, 0.0, -1e30),
                         jnp.where(col < V2, 0.0, -1e30),
                         jnp.where(col < V3, 0.0, -1e30)],
                        axis=0).astype(jnp.float32)                # (3, 1, VSEG)
    return enc_params, alphas, rho_seg, segmask


# ----------------------------- pure-JAX f32 reference (for sanity) -----------------------------
def reference_forward(bows1, nbows1, bows2, nbows2, bows3, nbows3,
                      enc_params, alphas_b, rho_seg):
    (w11, b11, w12, b12, w21, b21, w22, b22,
     w31, b31, w32, b32, wh1, wh2, wh3, b_head) = enc_params
    f32 = jnp.float32

    def mlp(x, wa, ba, wb, bb):
        h = jax.nn.relu(x @ wa.astype(f32) + ba)
        return jax.nn.relu(h @ wb.astype(f32) + bb)

    h1 = mlp(nbows1, w11, b11, w12, b12)
    h2 = mlp(nbows2, w21, b21, w22, b22)
    h3 = mlp(nbows3, w31, b31, w32, b32)
    head = (h1 @ wh1.astype(f32) + h2 @ wh2.astype(f32)
            + h3 @ wh3.astype(f32) + b_head)
    mu, ls = head[:, :K], head[:, K:]
    kl = jnp.mean(-0.5 * jnp.sum(1 + ls - mu ** 2 - jnp.exp(ls), axis=-1))
    theta = jax.nn.softmax(mu, axis=1)

    alphas = alphas_b.astype(f32)

    def dec(i, V, bows):
        rho = rho_seg[i, :, :V].astype(f32)               # (E, V)
        logit = alphas @ rho                              # (K, V)
        p = jax.nn.softmax(logit, axis=1)
        beta = p.T                                        # (V, K)
        preds = jnp.log(theta @ p + 1e-6)
        recon = jnp.mean(-jnp.sum(preds * bows, axis=1))
        return recon, beta, preds

    r1, beta1, preds1 = dec(0, V1, bows1)
    r2, beta2, preds2 = dec(1, V2, bows2)
    r3, beta3, preds3 = dec(2, V3, bows3)
    return (r1, r2, r3, kl, beta1, beta2, beta3, preds1, preds2, preds3, theta)


if __name__ == "__main__":
    key = jax.random.PRNGKey(0)
    k_in, k_par = jax.random.split(key)
    kb1, kb2, kb3 = jax.random.split(k_in, 3)

    def make_bows(k, V):
        bows = jnp.floor(jax.random.uniform(k, (B, V), jnp.float32) * 4.0)
        nbows = bows / jnp.maximum(jnp.sum(bows, axis=1, keepdims=True), 1.0)
        return bows, nbows

    bows1, nbows1 = make_bows(kb1, V1)
    bows2, nbows2 = make_bows(kb2, V2)
    bows3, nbows3 = make_bows(kb3, V3)

    enc_params, alphas, rho_seg, segmask = init_params(k_par)

    out = multietm_forward(bows1, nbows1, bows2, nbows2, bows3, nbows3,
                           enc_params, alphas, rho_seg, segmask)
    out = jax.block_until_ready(out)

    ref = reference_forward(bows1, nbows1, bows2, nbows2, bows3, nbows3,
                            enc_params, alphas, rho_seg)

    for o, r in zip(out, ref):
        np.testing.assert_allclose(np.asarray(o), np.asarray(r), rtol=2e-2, atol=2e-2)

    # basic invariants
    theta = np.asarray(out[10])
    assert np.allclose(theta.sum(axis=1), 1.0, atol=1e-3)
    assert all(np.isfinite(np.asarray(o)).all() for o in out)

    print("KERNEL_OK")
</pallas_src>

<mosaic_0001>
module attributes {stable_mosaic.version = 11 : i64} {
  func.func @multietm_kernel(%arg0: i32, %arg1: memref<8x256xbf16, #tpu.memory_space<vmem>>, %arg2: memref<8x384xbf16, #tpu.memory_space<vmem>>, %arg3: memref<8x512xbf16, #tpu.memory_space<vmem>>, %arg4: memref<1x8x512xf32, #tpu.memory_space<vmem>>, %arg5: memref<256x128xbf16, #tpu.memory_space<vmem>>, %arg6: memref<1x128xf32, #tpu.memory_space<vmem>>, %arg7: memref<128x128xbf16, #tpu.memory_space<vmem>>, %arg8: memref<1x128xf32, #tpu.memory_space<vmem>>, %arg9: memref<384x128xbf16, #tpu.memory_space<vmem>>, %arg10: memref<1x128xf32, #tpu.memory_space<vmem>>, %arg11: memref<128x128xbf16, #tpu.memory_space<vmem>>, %arg12: memref<1x128xf32, #tpu.memory_space<vmem>>, %arg13: memref<512x128xbf16, #tpu.memory_space<vmem>>, %arg14: memref<1x128xf32, #tpu.memory_space<vmem>>, %arg15: memref<128x128xbf16, #tpu.memory_space<vmem>>, %arg16: memref<1x128xf32, #tpu.memory_space<vmem>>, %arg17: memref<128x50xbf16, #tpu.memory_space<vmem>>, %arg18: memref<128x50xbf16, #tpu.memory_space<vmem>>, %arg19: memref<128x50xbf16, #tpu.memory_space<vmem>>, %arg20: memref<1x50xf32, #tpu.memory_space<vmem>>, %arg21: memref<25x128xbf16, #tpu.memory_space<vmem>>, %arg22: memref<1x128x512xbf16, #tpu.memory_space<vmem>>, %arg23: memref<1x1x512xf32, #tpu.memory_space<vmem>>, %arg24: memref<8x25xf32, #tpu.memory_space<vmem>>, %arg25: memref<1x25x512xf32, #tpu.memory_space<vmem>>, %arg26: memref<1x8x512xf32, #tpu.memory_space<vmem>>, %arg27: memref<4xf32, #tpu.memory_space<smem>>, %arg28: memref<8x25xf32, #tpu.memory_space<vmem>>) attributes {dimension_semantics = [#tpu.dimension_semantics<arbitrary>], iteration_bounds = array<i64: 3>, scalar_prefetch = 0 : i64, scratch_operands = 1 : i64, tpu.core_type = #tpu.core_type<tc>, window_params = [{pipeline_mode = #tpu.pipeline_mode<synchronous>, transform_indices = @transform_0, window_bounds = array<i64: 8, 256>}, {pipeline_mode = #tpu.pipeline_mode<synchronous>, transform_indices = @transform_1, window_bounds = array<i64: 8, 384>}, {pipeline_mode = #tpu.pipeline_mode<synchronous>, transform_indices = @transform_2, window_bounds = array<i64: 8, 512>}, {transform_indices = @transform_3, window_bounds = array<i64: 1, 8, 512>}, {pipeline_mode = #tpu.pipeline_mode<synchronous>, transform_indices = @transform_4, window_bounds = array<i64: 256, 128>}, {pipeline_mode = #tpu.pipeline_mode<synchronous>, transform_indices = @transform_5, window_bounds = array<i64: 1, 128>}, {pipeline_mode = #tpu.pipeline_mode<synchronous>, transform_indices = @transform_6, window_bounds = array<i64: 128, 128>}, {pipeline_mode = #tpu.pipeline_mode<synchronous>, transform_indices = @transform_7, window_bounds = array<i64: 1, 128>}, {pipeline_mode = #tpu.pipeline_mode<synchronous>, transform_indices = @transform_8, window_bounds = array<i64: 384, 128>}, {pipeline_mode = #tpu.pipeline_mode<synchronous>, transform_indices = @transform_9, window_bounds = array<i64: 1, 128>}, {pipeline_mode = #tpu.pipeline_mode<synchronous>, transform_indices = @transform_10, window_bounds = array<i64: 128, 128>}, {pipeline_mode = #tpu.pipeline_mode<synchronous>, transform_indices = @transform_11, window_bounds = array<i64: 1, 128>}, {pipeline_mode = #tpu.pipeline_mode<synchronous>, transform_indices = @transform_12, window_bounds = array<i64: 512, 128>}, {pipeline_mode = #tpu.pipeline_mode<synchronous>, transform_indices = @transform_13, window_bounds = array<i64: 1, 128>}, {pipeline_mode = #tpu.pipeline_mode<synchronous>, transform_indices = @transform_14, window_bounds = array<i64: 128, 128>}, {pipeline_mode = #tpu.pipeline_mode<synchronous>, transform_indices = @transform_15, window_bounds = array<i64: 1, 128>}, {pipeline_mode = #tpu.pipeline_mode<synchronous>, transform_indices = @transform_16, window_bounds = array<i64: 128, 50>}, {pipeline_mode = #tpu.pipeline_mode<synchronous>, transform_indices = @transform_17, window_bounds = array<i64: 128, 50>}, {pipeline_mode = #tpu.pipeline_mode<synchronous>, transform_indices = @transform_18, window_bounds = array<i64: 128, 50>}, {pipeline_mode = #tpu.pipeline_mode<synchronous>, transform_indices = @transform_19, window_bounds = array<i64: 1, 50>}, {pipeline_mode = #tpu.pipeline_mode<synchronous>, transform_indices = @transform_20, window_bounds = array<i64: 25, 128>}, {transform_indices = @transform_21, window_bounds = array<i64: 1, 128, 512>}, {transform_indices = @transform_22, window_bounds = array<i64: 1, 1, 512>}, {pipeline_mode = #tpu.pipeline_mode<synchronous>, transform_indices = @transform_23, window_bounds = array<i64: 8, 25>}, {transform_indices = @transform_24, window_bounds = array<i64: 1, 25, 512>}, {transform_indices = @transform_25, window_bounds = array<i64: 1, 8, 512>}, {transform_indices = @transform_26, window_bounds = array<i64: 4>}]} {
    %c0_i32 = arith.constant 0 : i32
    %0 = arith.cmpi eq, %arg0, %c0_i32 : i32
    %1 = arith.extui %0 : i1 to i32
    %c0_i32_0 = arith.constant 0 : i32
    %2 = arith.cmpi ne, %1, %c0_i32_0 : i32
    scf.if %2 {
      %c0_26 = arith.constant 0 : index
      %c0_27 = arith.constant 0 : index
      %42 = vector.load %arg1[%c0_26, %c0_27] : memref<8x256xbf16, #tpu.memory_space<vmem>>, vector<8x256xbf16>
      %c0_28 = arith.constant 0 : index
      %c0_29 = arith.constant 0 : index
      %43 = vector.load %arg5[%c0_28, %c0_29] : memref<256x128xbf16, #tpu.memory_space<vmem>>, vector<256x128xbf16>
      %cst_30 = arith.constant dense<0.000000e+00> : vector<8x128xf32>
      %44 = tpu.matmul %42, %43, %cst_30 {dimension_numbers = #tpu.dot_dimension_numbers<[1], [0], [0], [1], [0, 0, 1, 1], [], []>} : vector<8x256xbf16>, vector<256x128xbf16>, vector<8x128xf32> -> vector<8x128xf32>
      %c0_31 = arith.constant 0 : index
      %c0_32 = arith.constant 0 : index
      %45 = vector.load %arg6[%c0_31, %c0_32] : memref<1x128xf32, #tpu.memory_space<vmem>>, vector<1x128xf32>
      %46 = vector.broadcast %45 : vector<1x128xf32> to vector<8x128xf32>
      %47 = arith.addf %44, %46 : vector<8x128xf32>
      %cst_33 = arith.constant 0.000000e+00 : f32
      %48 = vector.broadcast %cst_33 : f32 to vector<8x128xf32>
      %49 = arith.maximumf %47, %48 : vector<8x128xf32>
      %50 = arith.truncf %49 : vector<8x128xf32> to vector<8x128xbf16>
      %c0_34 = arith.constant 0 : index
      %c0_35 = arith.constant 0 : index
      %51 = vector.load %arg7[%c0_34, %c0_35] : memref<128x128xbf16, #tpu.memory_space<vmem>>, vector<128x128xbf16>
      %cst_36 = arith.constant dense<0.000000e+00> : vector<8x128xf32>
      %52 = tpu.matmul %50, %51, %cst_36 {dimension_numbers = #tpu.dot_dimension_numbers<[1], [0], [0], [1], [0, 0, 1, 1], [], []>} : vector<8x128xbf16>, vector<128x128xbf16>, vector<8x128xf32> -> vector<8x128xf32>
      %c0_37 = arith.constant 0 : index
      %c0_38 = arith.constant 0 : index
      %53 = vector.load %arg8[%c0_37, %c0_38] : memref<1x128xf32, #tpu.memory_space<vmem>>, vector<1x128xf32>
      %54 = vector.broadcast %53 : vector<1x128xf32> to vector<8x128xf32>
      %55 = arith.addf %52, %54 : vector<8x128xf32>
      %cst_39 = arith.constant 0.000000e+00 : f32
      %56 = vector.broadcast %cst_39 : f32 to vector<8x128xf32>
      %57 = arith.maximumf %55, %56 : vector<8x128xf32>
      %c0_40 = arith.constant 0 : index
      %c0_41 = arith.constant 0 : index
      %58 = vector.load %arg2[%c0_40, %c0_41] : memref<8x384xbf16, #tpu.memory_space<vmem>>, vector<8x384xbf16>
      %c0_42 = arith.constant 0 : index
      %c0_43 = arith.constant 0 : index
      %59 = vector.load %arg9[%c0_42, %c0_43] : memref<384x128xbf16, #tpu.memory_space<vmem>>, vector<384x128xbf16>
      %cst_44 = arith.constant dense<0.000000e+00> : vector<8x128xf32>
      %60 = tpu.matmul %58, %59, %cst_44 {dimension_numbers = #tpu.dot_dimension_numbers<[1], [0], [0], [1], [0, 0, 1, 1], [], []>} : vector<8x384xbf16>, vector<384x128xbf16>, vector<8x128xf32> -> vector<8x128xf32>
      %c0_45 = arith.constant 0 : index
      %c0_46 = arith.constant 0 : index
      %61 = vector.load %arg10[%c0_45, %c0_46] : memref<1x128xf32, #tpu.memory_space<vmem>>, vector<1x128xf32>
      %62 = vector.broadcast %61 : vector<1x128xf32> to vector<8x128xf32>
      %63 = arith.addf %60, %62 : vector<8x128xf32>
      %cst_47 = arith.constant 0.000000e+00 : f32
      %64 = vector.broadcast %cst_47 : f32 to vector<8x128xf32>
      %65 = arith.maximumf %63, %64 : vector<8x128xf32>
      %66 = arith.truncf %65 : vector<8x128xf32> to vector<8x128xbf16>
      %c0_48 = arith.constant 0 : index
      %c0_49 = arith.constant 0 : index
      %67 = vector.load %arg11[%c0_48, %c0_49] : memref<128x128xbf16, #tpu.memory_space<vmem>>, vector<128x128xbf16>
      %cst_50 = arith.constant dense<0.000000e+00> : vector<8x128xf32>
      %68 = tpu.matmul %66, %67, %cst_50 {dimension_numbers = #tpu.dot_dimension_numbers<[1], [0], [0], [1], [0, 0, 1, 1], [], []>} : vector<8x128xbf16>, vector<128x128xbf16>, vector<8x128xf32> -> vector<8x128xf32>
      %c0_51 = arith.constant 0 : index
      %c0_52 = arith.constant 0 : index
      %69 = vector.load %arg12[%c0_51, %c0_52] : memref<1x128xf32, #tpu.memory_space<vmem>>, vector<1x128xf32>
      %70 = vector.broadcast %69 : vector<1x128xf32> to vector<8x128xf32>
      %71 = arith.addf %68, %70 : vector<8x128xf32>
      %cst_53 = arith.constant 0.000000e+00 : f32
      %72 = vector.broadcast %cst_53 : f32 to vector<8x128xf32>
      %73 = arith.maximumf %71, %72 : vector<8x128xf32>
      %c0_54 = arith.constant 0 : index
      %c0_55 = arith.constant 0 : index
      %74 = vector.load %arg3[%c0_54, %c0_55] : memref<8x512xbf16, #tpu.memory_space<vmem>>, vector<8x512xbf16>
      %c0_56 = arith.constant 0 : index
      %c0_57 = arith.constant 0 : index
      %75 = vector.load %arg13[%c0_56, %c0_57] : memref<512x128xbf16, #tpu.memory_space<vmem>>, vector<512x128xbf16>
      %cst_58 = arith.constant dense<0.000000e+00> : vector<8x128xf32>
      %76 = tpu.matmul %74, %75, %cst_58 {dimension_numbers = #tpu.dot_dimension_numbers<[1], [0], [0], [1], [0, 0, 1, 1], [], []>} : vector<8x512xbf16>, vector<512x128xbf16>, vector<8x128xf32> -> vector<8x128xf32>
      %c0_59 = arith.constant 0 : index
      %c0_60 = arith.constant 0 : index
      %77 = vector.load %arg14[%c0_59, %c0_60] : memref<1x128xf32, #tpu.memory_space<vmem>>, vector<1x128xf32>
      %78 = vector.broadcast %77 : vector<1x128xf32> to vector<8x128xf32>
      %79 = arith.addf %76, %78 : vector<8x128xf32>
      %cst_61 = arith.constant 0.000000e+00 : f32
      %80 = vector.broadcast %cst_61 : f32 to vector<8x128xf32>
      %81 = arith.maximumf %79, %80 : vector<8x128xf32>
      %82 = arith.truncf %81 : vector<8x128xf32> to vector<8x128xbf16>
      %c0_62 = arith.constant 0 : index
      %c0_63 = arith.constant 0 : index
      %83 = vector.load %arg15[%c0_62, %c0_63] : memref<128x128xbf16, #tpu.memory_space<vmem>>, vector<128x128xbf16>
      %cst_64 = arith.constant dense<0.000000e+00> : vector<8x128xf32>
      %84 = tpu.matmul %82, %83, %cst_64 {dimension_numbers = #tpu.dot_dimension_numbers<[1], [0], [0], [1], [0, 0, 1, 1], [], []>} : vector<8x128xbf16>, vector<128x128xbf16>, vector<8x128xf32> -> vector<8x128xf32>
      %c0_65 = arith.constant 0 : index
      %c0_66 = arith.constant 0 : index
      %85 = vector.load %arg16[%c0_65, %c0_66] : memref<1x128xf32, #tpu.memory_space<vmem>>, vector<1x128xf32>
      %86 = vector.broadcast %85 : vector<1x128xf32> to vector<8x128xf32>
      %87 = arith.addf %84, %86 : vector<8x128xf32>
      %cst_67 = arith.constant 0.000000e+00 : f32
      %88 = vector.broadcast %cst_67 : f32 to vector<8x128xf32>
      %89 = arith.maximumf %87, %88 : vector<8x128xf32>
      %90 = arith.truncf %57 : vector<8x128xf32> to vector<8x128xbf16>
      %c0_68 = arith.constant 0 : index
      %c0_69 = arith.constant 0 : index
      %91 = vector.load %arg17[%c0_68, %c0_69] : memref<128x50xbf16, #tpu.memory_space<vmem>>, vector<128x50xbf16>
      %cst_70 = arith.constant dense<0.000000e+00> : vector<8x50xf32>
      %92 = tpu.matmul %90, %91, %cst_70 {dimension_numbers = #tpu.dot_dimension_numbers<[1], [0], [0], [1], [0, 0, 1, 1], [], []>} : vector<8x128xbf16>, vector<128x50xbf16>, vector<8x50xf32> -> vector<8x50xf32>
      %93 = arith.truncf %73 : vector<8x128xf32> to vector<8x128xbf16>
      %c0_71 = arith.constant 0 : index
      %c0_72 = arith.constant 0 : index
      %94 = vector.load %arg18[%c0_71, %c0_72] : memref<128x50xbf16, #tpu.memory_space<vmem>>, vector<128x50xbf16>
      %cst_73 = arith.constant dense<0.000000e+00> : vector<8x50xf32>
      %95 = tpu.matmul %93, %94, %cst_73 {dimension_numbers = #tpu.dot_dimension_numbers<[1], [0], [0], [1], [0, 0, 1, 1], [], []>} : vector<8x128xbf16>, vector<128x50xbf16>, vector<8x50xf32> -> vector<8x50xf32>
      %96 = arith.addf %92, %95 : vector<8x50xf32>
      %97 = arith.truncf %89 : vector<8x128xf32> to vector<8x128xbf16>
      %c0_74 = arith.constant 0 : index
      %c0_75 = arith.constant 0 : index
      %98 = vector.load %arg19[%c0_74, %c0_75] : memref<128x50xbf16, #tpu.memory_space<vmem>>, vector<128x50xbf16>
      %cst_76 = arith.constant dense<0.000000e+00> : vector<8x50xf32>
      %99 = tpu.matmul %97, %98, %cst_76 {dimension_numbers = #tpu.dot_dimension_numbers<[1], [0], [0], [1], [0, 0, 1, 1], [], []>} : vector<8x128xbf16>, vector<128x50xbf16>, vector<8x50xf32> -> vector<8x50xf32>
      %100 = arith.addf %96, %99 : vector<8x50xf32>
      %c0_77 = arith.constant 0 : index
      %c0_78 = arith.constant 0 : index
      %101 = vector.load %arg20[%c0_77, %c0_78] : memref<1x50xf32, #tpu.memory_space<vmem>>, vector<1x50xf32>
      %102 = vector.broadcast %101 : vector<1x50xf32> to vector<8x50xf32>
      %103 = arith.addf %100, %102 : vector<8x50xf32>
      %104 = vector.extract_strided_slice %103 {offsets = [0, 0], sizes = [8, 25], strides = [1, 1]} : vector<8x50xf32> to vector<8x25xf32>
      %105 = vector.extract_strided_slice %103 {offsets = [0, 25], sizes = [8, 25], strides = [1, 1]} : vector<8x50xf32> to vector<8x25xf32>
      %cst_79 = arith.constant 1.000000e+00 : f32
      %106 = vector.broadcast %cst_79 : f32 to vector<8x25xf32>
      %107 = arith.addf %106, %105 : vector<8x25xf32>
      %108 = arith.mulf %104, %104 : vector<8x25xf32>
      %109 = arith.subf %107, %108 : vector<8x25xf32>
      %110 = math.exp %105 : vector<8x25xf32>
      %111 = arith.subf %109, %110 : vector<8x25xf32>
      %112 = vector.shape_cast %111 : vector<8x25xf32> to vector<1x8x25xf32>
      %cst_80 = arith.constant dense<0.000000e+00> : vector<1xf32>
      %113 = vector.multi_reduction <add>, %112, %cst_80 [1, 2] : vector<1x8x25xf32> to vector<1xf32>
      %114 = vector.shape_cast %113 : vector<1xf32> to vector<1x1x1xf32>
      %115 = vector.extract %114[0, 0, 0] : f32 from vector<1x1x1xf32>
      %cst_81 = arith.constant -5.000000e-01 : f32
      %116 = arith.mulf %cst_81, %115 : f32
      %cst_82 = arith.constant 8.000000e+00 : f32
      %117 = arith.divf %116, %cst_82 : f32
      %c3 = arith.constant 3 : index
      %118 = memref.load %arg27[%c3] : memref<4xf32, #tpu.memory_space<smem>>
      memref.store %117, %arg27[%c3] : memref<4xf32, #tpu.memory_space<smem>>
      %cst_83 = arith.constant dense<0xFF800000> : vector<8xf32>
      %119 = vector.multi_reduction <maximumf>, %104, %cst_83 [1] : vector<8x25xf32> to vector<8xf32>
      %120 = vector.shape_cast %119 : vector<8xf32> to vector<8x1xf32>
      %121 = vector.broadcast %120 : vector<8x1xf32> to vector<8x25xf32>
      %122 = arith.subf %104, %121 : vector<8x25xf32>
      %123 = math.exp %122 : vector<8x25xf32>
      %cst_84 = arith.constant dense<0.000000e+00> : vector<8xf32>
      %124 = vector.multi_reduction <add>, %123, %cst_84 [1] : vector<8x25xf32> to vector<8xf32>
      %125 = vector.shape_cast %124 : vector<8xf32> to vector<8x1xf32>
      %126 = vector.broadcast %125 : vector<8x1xf32> to vector<8x25xf32>
      %127 = arith.divf %123, %126 : vector<8x25xf32>
      %c0_85 = arith.constant 0 : index
      %c0_86 = arith.constant 0 : index
      %128 = vector.load %arg28[%c0_85, %c0_86] : memref<8x25xf32, #tpu.memory_space<vmem>>, vector<8x25xf32>
      tpu.vector_store %arg28[%c0_85, %c0_86], %127 {strides = array<i32>} : memref<8x25xf32, #tpu.memory_space<vmem>>, vector<8x25xf32>,
      %c0_87 = arith.constant 0 : index
      %c0_88 = arith.constant 0 : index
      %129 = vector.load %arg24[%c0_87, %c0_88] : memref<8x25xf32, #tpu.memory_space<vmem>>, vector<8x25xf32>
      tpu.vector_store %arg24[%c0_87, %c0_88], %127 {strides = array<i32>} : memref<8x25xf32, #tpu.memory_space<vmem>>, vector<8x25xf32>,
    } else {
    }
    %c0 = arith.constant 0 : index
    %c0_1 = arith.constant 0 : index
    %3 = vector.load %arg21[%c0, %c0_1] : memref<25x128xbf16, #tpu.memory_space<vmem>>, vector<25x128xbf16>
    %c0_2 = arith.constant 0 : index
    %c0_3 = arith.constant 0 : index
    %c0_4 = arith.constant 0 : index
    %4 = vector.load %arg22[%c0_2, %c0_3, %c0_4] : memref<1x128x512xbf16, #tpu.memory_space<vmem>>, vector<1x128x512xbf16>
    %5 = vector.shape_cast %4 : vector<1x128x512xbf16> to vector<128x512xbf16>
    %cst = arith.constant dense<0.000000e+00> : vector<25x512xf32>
    %6 = tpu.matmul %3, %5, %cst {dimension_numbers = #tpu.dot_dimension_numbers<[1], [0], [0], [1], [0, 0, 1, 1], [], []>} : vector<25x128xbf16>, vector<128x512xbf16>, vector<25x512xf32> -> vector<25x512xf32>
    %c0_5 = arith.constant 0 : index
    %c0_6 = arith.constant 0 : index
    %c0_7 = arith.constant 0 : index
    %7 = vector.load %arg23[%c0_5, %c0_6, %c0_7] : memref<1x1x512xf32, #tpu.memory_space<vmem>>, vector<1x1x512xf32>
    %8 = vector.shape_cast %7 : vector<1x1x512xf32> to vector<1x512xf32>
    %9 = vector.broadcast %8 : vector<1x512xf32> to vector<25x512xf32>
    %10 = arith.addf %6, %9 : vector<25x512xf32>
    %cst_8 = arith.constant dense<0xFF800000> : vector<25xf32>
    %11 = vector.multi_reduction <maximumf>, %10, %cst_8 [1] : vector<25x512xf32> to vector<25xf32>
    %12 = vector.shape_cast %11 : vector<25xf32> to vector<25x1xf32>
    %13 = vector.broadcast %12 : vector<25x1xf32> to vector<25x512xf32>
    %14 = arith.subf %10, %13 : vector<25x512xf32>
    %15 = math.exp %14 : vector<25x512xf32>
    %cst_9 = arith.constant dense<0.000000e+00> : vector<25xf32>
    %16 = vector.multi_reduction <add>, %15, %cst_9 [1] : vector<25x512xf32> to vector<25xf32>
    %17 = vector.shape_cast %16 : vector<25xf32> to vector<25x1xf32>
    %18 = vector.broadcast %17 : vector<25x1xf32> to vector<25x512xf32>
    %19 = arith.divf %15, %18 : vector<25x512xf32>
    %c0_10 = arith.constant 0 : index
    %c0_11 = arith.constant 0 : index
    %c0_12 = arith.constant 0 : index
    %20 = vector.load %arg25[%c0_10, %c0_11, %c0_12] : memref<1x25x512xf32, #tpu.memory_space<vmem>>, vector<1x25x512xf32>
    %21 = vector.shape_cast %20 : vector<1x25x512xf32> to vector<25x512xf32>
    %22 = vector.shape_cast %19 : vector<25x512xf32> to vector<1x25x512xf32>
    tpu.vector_store %arg25[%c0_10, %c0_11, %c0_12], %22 {strides = array<i32>} : memref<1x25x512xf32, #tpu.memory_space<vmem>>, vector<1x25x512xf32>,
    %c0_13 = arith.constant 0 : index
    %c0_14 = arith.constant 0 : index
    %23 = vector.load %arg28[%c0_13, %c0_14] : memref<8x25xf32, #tpu.memory_space<vmem>>, vector<8x25xf32>
    %cst_15 = arith.constant dense<0.000000e+00> : vector<8x512xf32>
    %24 = tpu.matmul %23, %19, %cst_15 {dimension_numbers = #tpu.dot_dimension_numbers<[1], [0], [0], [1], [0, 0, 1, 1], [], []>} : vector<8x25xf32>, vector<25x512xf32>, vector<8x512xf32> -> vector<8x512xf32>
    %cst_16 = arith.constant 9.99999997E-7 : f32
    %25 = vector.broadcast %cst_16 : f32 to vector<8x512xf32>
    %26 = arith.addf %24, %25 : vector<8x512xf32>
    %27 = math.log %26 : vector<8x512xf32>
    %c0_17 = arith.constant 0 : index
    %c0_18 = arith.constant 0 : index
    %c0_19 = arith.constant 0 : index
    %28 = vector.load %arg26[%c0_17, %c0_18, %c0_19] : memref<1x8x512xf32, #tpu.memory_space<vmem>>, vector<1x8x512xf32>
    %29 = vector.shape_cast %28 : vector<1x8x512xf32> to vector<8x512xf32>
    %30 = vector.shape_cast %27 : vector<8x512xf32> to vector<1x8x512xf32>
    tpu.vector_store %arg26[%c0_17, %c0_18, %c0_19], %30 {strides = array<i32>} : memref<1x8x512xf32, #tpu.memory_space<vmem>>, vector<1x8x512xf32>,
    %c0_20 = arith.constant 0 : index
    %c0_21 = arith.constant 0 : index
    %c0_22 = arith.constant 0 : index
    %31 = vector.load %arg4[%c0_20, %c0_21, %c0_22] : memref<1x8x512xf32, #tpu.memory_space<vmem>>, vector<1x8x512xf32>
    %32 = vector.shape_cast %31 : vector<1x8x512xf32> to vector<8x512xf32>
    %33 = arith.mulf %27, %32 : vector<8x512xf32>
    %34 = vector.shape_cast %33 : vector<8x512xf32> to vector<1x8x512xf32>
    %cst_23 = arith.constant dense<0.000000e+00> : vector<1xf32>
    %35 = vector.multi_reduction <add>, %34, %cst_23 [1, 2] : vector<1x8x512xf32> to vector<1xf32>
    %36 = vector.shape_cast %35 : vector<1xf32> to vector<1x1x1xf32>
    %37 = vector.extract %36[0, 0, 0] : f32 from vector<1x1x1xf32>
    %cst_24 = arith.constant 0.000000e+00 : f32
    %38 = arith.subf %cst_24, %37 : f32
    %cst_25 = arith.constant 1.250000e-01 : f32
    %39 = arith.mulf %38, %cst_25 : f32
    %40 = arith.index_cast %arg0 : i32 to index
    %41 = memref.load %arg27[%40] : memref<4xf32, #tpu.memory_space<smem>>
    memref.store %39, %arg27[%40] : memref<4xf32, #tpu.memory_space<smem>>
    return
  }
  func.func @transform_0(%arg0: i32) -> (i32, i32) {
    %c0_i32 = arith.constant 0 : i32
    %c0_i32_0 = arith.constant 0 : i32
    %c0_i32_1 = arith.constant 0 : i32
    return %c0_i32, %c0_i32_0 : i32, i32
  }
  func.func @transform_1(%arg0: i32) -> (i32, i32) {
    %c0_i32 = arith.constant 0 : i32
    %c0_i32_0 = arith.constant 0 : i32
    %c0_i32_1 = arith.constant 0 : i32
    return %c0_i32, %c0_i32_0 : i32, i32
  }
  func.func @transform_2(%arg0: i32) -> (i32, i32) {
    %c0_i32 = arith.constant 0 : i32
    %c0_i32_0 = arith.constant 0 : i32
    %c0_i32_1 = arith.constant 0 : i32
    return %c0_i32, %c0_i32_0 : i32, i32
  }
  func.func @transform_3(%arg0: i32) -> (i32, i32, i32) {
    %c0_i32 = arith.constant 0 : i32
    %c0_i32_0 = arith.constant 0 : i32
    %c0_i32_1 = arith.constant 0 : i32
    return %arg0, %c0_i32, %c0_i32_0 : i32, i32, i32
  }
  func.func @transform_4(%arg0: i32) -> (i32, i32) {
    %c0_i32 = arith.constant 0 : i32
    %c0_i32_0 = arith.constant 0 : i32
    %c0_i32_1 = arith.constant 0 : i32
    return %c0_i32, %c0_i32_0 : i32, i32
  }
  func.func @transform_5(%arg0: i32) -> (i32, i32) {
    %c0_i32 = arith.constant 0 : i32
    %c0_i32_0 = arith.constant 0 : i32
    %c0_i32_1 = arith.constant 0 : i32
    return %c0_i32, %c0_i32_0 : i32, i32
  }
  func.func @transform_6(%arg0: i32) -> (i32, i32) {
    %c0_i32 = arith.constant 0 : i32
    %c0_i32_0 = arith.constant 0 : i32
    %c0_i32_1 = arith.constant 0 : i32
    return %c0_i32, %c0_i32_0 : i32, i32
  }
  func.func @transform_7(%arg0: i32) -> (i32, i32) {
    %c0_i32 = arith.constant 0 : i32
    %c0_i32_0 = arith.constant 0 : i32
    %c0_i32_1 = arith.constant 0 : i32
    return %c0_i32, %c0_i32_0 : i32, i32
  }
  func.func @transform_8(%arg0: i32) -> (i32, i32) {
    %c0_i32 = arith.constant 0 : i32
    %c0_i32_0 = arith.constant 0 : i32
    %c0_i32_1 = arith.constant 0 : i32
    return %c0_i32, %c0_i32_0 : i32, i32
  }
  func.func @transform_9(%arg0: i32) -> (i32, i32) {
    %c0_i32 = arith.constant 0 : i32
    %c0_i32_0 = arith.constant 0 : i32
    %c0_i32_1 = arith.constant 0 : i32
    return %c0_i32, %c0_i32_0 : i32, i32
  }
  func.func @transform_10(%arg0: i32) -> (i32, i32) {
    %c0_i32 = arith.constant 0 : i32
    %c0_i32_0 = arith.constant 0 : i32
    %c0_i32_1 = arith.constant 0 : i32
    return %c0_i32, %c0_i32_0 : i32, i32
  }
  func.func @transform_11(%arg0: i32) -> (i32, i32) {
    %c0_i32 = arith.constant 0 : i32
    %c0_i32_0 = arith.constant 0 : i32
    %c0_i32_1 = arith.constant 0 : i32
    return %c0_i32, %c0_i32_0 : i32, i32
  }
  func.func @transform_12(%arg0: i32) -> (i32, i32) {
    %c0_i32 = arith.constant 0 : i32
    %c0_i32_0 = arith.constant 0 : i32
    %c0_i32_1 = arith.constant 0 : i32
    return %c0_i32, %c0_i32_0 : i32, i32
  }
  func.func @transform_13(%arg0: i32) -> (i32, i32) {
    %c0_i32 = arith.constant 0 : i32
    %c0_i32_0 = arith.constant 0 : i32
    %c0_i32_1 = arith.constant 0 : i32
    return %c0_i32, %c0_i32_0 : i32, i32
  }
  func.func @transform_14(%arg0: i32) -> (i32, i32) {
    %c0_i32 = arith.constant 0 : i32
    %c0_i32_0 = arith.constant 0 : i32
    %c0_i32_1 = arith.constant 0 : i32
    return %c0_i32, %c0_i32_0 : i32, i32
  }
  func.func @transform_15(%arg0: i32) -> (i32, i32) {
    %c0_i32 = arith.constant 0 : i32
    %c0_i32_0 = arith.constant 0 : i32
    %c0_i32_1 = arith.constant 0 : i32
    return %c0_i32, %c0_i32_0 : i32, i32
  }
  func.func @transform_16(%arg0: i32) -> (i32, i32) {
    %c0_i32 = arith.constant 0 : i32
    %c0_i32_0 = arith.constant 0 : i32
    %c0_i32_1 = arith.constant 0 : i32
    return %c0_i32, %c0_i32_0 : i32, i32
  }
  func.func @transform_17(%arg0: i32) -> (i32, i32) {
    %c0_i32 = arith.constant 0 : i32
    %c0_i32_0 = arith.constant 0 : i32
    %c0_i32_1 = arith.constant 0 : i32
    return %c0_i32, %c0_i32_0 : i32, i32
  }
  func.func @transform_18(%arg0: i32) -> (i32, i32) {
    %c0_i32 = arith.constant 0 : i32
    %c0_i32_0 = arith.constant 0 : i32
    %c0_i32_1 = arith.constant 0 : i32
    return %c0_i32, %c0_i32_0 : i32, i32
  }
  func.func @transform_19(%arg0: i32) -> (i32, i32) {
    %c0_i32 = arith.constant 0 : i32
    %c0_i32_0 = arith.constant 0 : i32
    %c0_i32_1 = arith.constant 0 : i32
    return %c0_i32, %c0_i32_0 : i32, i32
  }
  func.func @transform_20(%arg0: i32) -> (i32, i32) {
    %c0_i32 = arith.constant 0 : i32
    %c0_i32_0 = arith.constant 0 : i32
    %c0_i32_1 = arith.constant 0 : i32
    return %c0_i32, %c0_i32_0 : i32, i32
  }
  func.func @transform_21(%arg0: i32) -> (i32, i32, i32) {
    %c0_i32 = arith.constant 0 : i32
    %c0_i32_0 = arith.constant 0 : i32
    %c0_i32_1 = arith.constant 0 : i32
    return %arg0, %c0_i32, %c0_i32_0 : i32, i32, i32
  }
  func.func @transform_22(%arg0: i32) -> (i32, i32, i32) {
    %c0_i32 = arith.constant 0 : i32
    %c0_i32_0 = arith.constant 0 : i32
    %c0_i32_1 = arith.constant 0 : i32
    return %arg0, %c0_i32, %c0_i32_0 : i32, i32, i32
  }
  func.func @transform_23(%arg0: i32) -> (i32, i32) {
    %c0_i32 = arith.constant 0 : i32
    %c0_i32_0 = arith.constant 0 : i32
    %c0_i32_1 = arith.constant 0 : i32
    return %c0_i32, %c0_i32_0 : i32, i32
  }
  func.func @transform_24(%arg0: i32) -> (i32, i32, i32) {
    %c0_i32 = arith.constant 0 : i32
    %c0_i32_0 = arith.constant 0 : i32
    %c0_i32_1 = arith.constant 0 : i32
    return %arg0, %c0_i32, %c0_i32_0 : i32, i32, i32
  }
  func.func @transform_25(%arg0: i32) -> (i32, i32, i32) {
    %c0_i32 = arith.constant 0 : i32
    %c0_i32_0 = arith.constant 0 : i32
    %c0_i32_1 = arith.constant 0 : i32
    return %arg0, %c0_i32, %c0_i32_0 : i32, i32, i32
  }
  func.func @transform_26(%arg0: i32) -> i32 {
    %c0_i32 = arith.constant 0 : i32
    %c0_i32_0 = arith.constant 0 : i32
    return %c0_i32 : i32
  }
}

</mosaic_0001>

<bundles_post_ra>
// kernel: multietm_forward.1
= control target key start
LH: loop header
LB: loop body
LE: loop exit
PB: predicated region body
PF: predicated region fallthrough
CT: control target
= control target key end

     0   :  { %s5711_s0 = inlined_call_operand.vmem [shape: bf16[8,256], index: 0, kind: input, shape index: {}]   ;;  %s5712_s1 = inlined_call_operand.vmem [shape: bf16[8,384], index: 1, kind: input, shape index: {}]   ;;  %s5713_s2 = inlined_call_operand.vmem [shape: bf16[8,512], index: 2, kind: input, shape index: {}]   ;;  %s5714_s3 = inlined_call_operand.vmem [shape: f32[3,8,512], index: 3, kind: input, shape index: {}]   ;;  %s5715_s4 = inlined_call_operand.vmem [shape: bf16[256,128], index: 4, kind: input, shape index: {}]   ;;  %s5716_s5 = inlined_call_operand.hbm [shape: f32[1,128], index: 5, kind: input, shape index: {}]   ;;  %s5717_s6 = inlined_call_operand.vmem [shape: bf16[128,128], index: 6, kind: input, shape index: {}]   ;;  %s5718_s7 = inlined_call_operand.hbm [shape: f32[1,128], index: 7, kind: input, shape index: {}]   ;;  %s5719_s8 = inlined_call_operand.vmem [shape: bf16[384,128], index: 8, kind: input, shape index: {}]   ;;  %s5720_s9 = inlined_call_operand.hbm [shape: f32[1,128], index: 9, kind: input, shape index: {}]   ;;  %s5721_s10 = inlined_call_operand.vmem [shape: bf16[128,128], index: 10, kind: input, shape index: {}]   ;;  %s5722_s11 = inlined_call_operand.hbm [shape: f32[1,128], index: 11, kind: input, shape index: {}]   ;;  %s5723_s12 = inlined_call_operand.vmem [shape: bf16[512,128], index: 12, kind: input, shape index: {}]   ;;  %s5724_s13 = inlined_call_operand.hbm [shape: f32[1,128], index: 13, kind: input, shape index: {}]   ;;  %s5725_s14 = inlined_call_operand.hbm [shape: bf16[128,128], index: 14, kind: input, shape index: {}]   ;;  %s5726_s15 = inlined_call_operand.hbm [shape: f32[1,128], index: 15, kind: input, shape index: {}]   ;;  %s5727_s16 = inlined_call_operand.vmem [shape: bf16[128,50], index: 16, kind: input, shape index: {}]   ;;  %s5728_s17 = inlined_call_operand.vmem [shape: bf16[128,50], index: 17, kind: input, shape index: {}]   ;;  %s5729_s18 = inlined_call_operand.vmem [shape: bf16[128,50], index: 18, kind: input, shape index: {}]   ;;  %s5730_s19 = inlined_call_operand.hbm [shape: f32[1,50], index: 19, kind: input, shape index: {}]   ;;  %s5731_s20 = inlined_call_operand.vmem [shape: bf16[25,128], index: 20, kind: input, shape index: {}]   ;;  %s5732_s21 = inlined_call_operand.hbm [shape: bf16[3,128,512], index: 21, kind: input, shape index: {}]   ;;  %s5733_s22 = inlined_call_operand.hbm [shape: f32[3,1,512], index: 22, kind: input, shape index: {}]   ;;  %s5734_s23 = inlined_call_operand.hbm [shape: f32[8,25], index: 23, kind: output, shape index: {0}]   ;;  %s5735_s24 = inlined_call_operand.vmem [shape: f32[3,25,512], index: 24, kind: output, shape index: {1}]   ;;  %s5736_s25 = inlined_call_operand.vmem [shape: f32[3,8,512], index: 25, kind: output, shape index: {2}]   ;;  %s5737_s26 = inlined_call_operand.vmem [shape: f32[4], index: 26, kind: output, shape index: {3}]  }
   0x1   :  { %5758 = sst [smem:[#allocation32_spill]] %s5711_s0 }
   0x2   :  { %5759 = sst [smem:[#allocation33_spill]] %s5712_s1 }
   0x3   :  { %5760 = sst [smem:[#allocation34_spill]] %s5713_s2 }
   0x4   :  { %5761 = sst [smem:[#allocation35_spill]] %s5714_s3 }
   0x5   :  { %5762 = sst [smem:[#allocation36_spill]] %s5715_s4 }
   0x6   :  { %5763 = sst [smem:[#allocation37_spill]] %s5716_s5 }
   0x7   :  { %5764 = sst [smem:[#allocation38_spill]] %s5717_s6 }
   0x8   :  { %5765 = sst [smem:[#allocation39_spill]] %s5718_s7 }
   0x9   :  { %5766 = sst [smem:[#allocation40_spill]] %s5719_s8 }
   0xa   :  { %5767 = sst [smem:[#allocation41_spill]] %s5720_s9 }
   0xb   :  { %5768 = sst [smem:[#allocation42_spill]] %s5721_s10 }
   0xc   :  { %5769 = sst [smem:[#allocation43_spill]] %s5722_s11 }
   0xd   :  { %5770 = sst [smem:[#allocation44_spill]] %s5725_s14 }
   0xe   :  { %5771 = sst [smem:[#allocation45_spill]] %s5729_s18 }
   0xf   :  { %5772 = sst [smem:[#allocation46_spill]] %s5731_s20 }
  0x10   :  { %5773 = sst [smem:[#allocation47_spill]] %s5732_s21 }
  0x11   :  { %5774 = sst [smem:[#allocation48_spill]] %s5734_s23 }
  0x12   :  { %5775 = sst [smem:[#allocation49_spill]] %s5737_s26 }
  0x13   :  { %32 = vsyncpa [#allocation4], 0 }
  0x14   :  { %33 = vsyncpa [#allocation8], 0 }
  0x15   :  { %34 = vsyncpa [#allocation11], 0 }
  0x16   :  { %35 = vsyncpa [#allocation14], 0 }
  0x17   :  { %36 = vsyncpa [#allocation17], 0 }
  0x18   :  { %37 = vsyncpa [#allocation5], 0 }
  0x19   :  { %38 = vsyncpa [#allocation6], 0  ;;  %s4872_s27 = smov 0   ;;  %s4874_s3 = smov 0  }
  0x1a   :  { %s4876_s7 = smov 0   ;;  %s4878_s28 = smov 0  }
  0x1b LB: > { %s4715_s8 = smov [#allocation3]   ;;  %s4893_s29 = sadd.s32 4294967295, %s4713_s28   ;;  %s4713_s28 = sphi %s4878_s28, %s5819_s28   ;;  %s4709_s7 = sphi %s4876_s7, %s5823_s7   ;;  %s4705_s3 = sphi %s4874_s3, %s5822_s3   ;;  %s4701_s27 = sphi %s4872_s27, %s5821_s27  }
  0x1c   : > { %s666_s4 = sshll.u32 %s4715_s8, 4  ;;  %p3448_p0 = scmp.ge.s32.totalorder %s4713_s28, 1  ;;  %s667_s4 = int_to_ptr.vmem [resolvable:$true] %s666_s4 }
  0x1d   : > { %p5746_p1 = scmp.eq.s32.totalorder %s4893_s29, 0  ;;  %p641_p2 = scmp.lt.s32.totalorder %s4713_s28, 4 }
  0x1e   : > { %s4716_s9 = smov [#allocation7]   ;;  %s4717_s2 = smov [#allocation10]  }
  0x1f   : > { %p4899_p4 = pnand %p3448_p0, %p641_p2  ;;  %s680_s30 = sshll.u32 %s4716_s9, 4  ;;  %s4905_s30 = int_to_ptr.vmem [resolvable:$true] %s680_s30 }
  0x20   : > { %s708_s5 = sshll.u32 %s4717_s2, 4  ;;  %s4718_s6 = smov [#allocation13]   ;;  %s4913_s5 = int_to_ptr.vmem [resolvable:$true] %s708_s5 }
  0x21   : > { %s5776_s0 = scalar_select %p4899_p4, 1, 0 }
  0x22   : > { %p4011_p5 = pneg %p4899_p4  ;;  %s4915_s1 = sshll.u32 %s4718_s6, 4  ;;  %s733_s1 = int_to_ptr.vmem [resolvable:$true] %s4915_s1 }
  0x23   : > { %s4360_s9 = scalar_lea.vmem %s667_s4, 16  ;;  %s4367_s2 = scalar_lea.vmem %s667_s4, 32 }
  0x24   : > { %p4909_p6 = pnand %p4011_p5, %p5746_p1  ;;  %p4361_p8 = scmp.ne.s32.totalorder %s667_s4, %s4360_s9 }
  0x25   : > { %p4368_p11 = scmp.lt.s32.totalorder %s667_s4, %s667_s4  ;;  %p4369_p12 = scmp.lt.s32.totalorder %s4367_s2, %s4360_s9 }
  0x26   : > { %s5777_s10 = scalar_select %p4909_p6, 1, 0 }
  0x27   : > { %p4919_p7 = pneg %p4909_p6  ;;  %p4370_p13 = por %p4369_p12, %p4368_p11 }
  0x29   : > { %p4363_p9 = pnand %p4361_p8, %p4919_p7 }
  0x2b   : > { %p4364_p10 = pneg %p4363_p9 }
  0x2d   : > { %p4371_p0 = pnand %p4370_p13, %p4364_p10 }
  0x2f   : > { %4374 = shalt.err (!%p4371_p0)
}
  0x30   : > { %s5779_s23 = sld [smem:[#allocation37_spill]]  ;;  %s4386_s20 = scalar_lea.vmem %s4905_s30, 16 }
  0x31   : > { %p4387_p2 = scmp.ne.s32.totalorder %s4905_s30, %s4386_s20  ;;  %s4393_s9 = scalar_lea.vmem %s4905_s30, 32 }
  0x32   : > { %p4394_p9 = scmp.lt.s32.totalorder %s4905_s30, %s4905_s30  ;;  %p4395_p10 = scmp.lt.s32.totalorder %s4393_s9, %s4386_s20 }
  0x33   : > { %p4389_p5 = pnand %p4387_p2, %p4919_p7 }
  0x34   : > { %p4396_p11 = por %p4395_p10, %p4394_p9 }
  0x35   : > { %p4390_p8 = pneg %p4389_p5 }
  0x36   : > { %4014 = dma.hbm_to_vmem [thread:$0]  (!%p4909_p6), %s5779_s23, 16, %s667_s4, [#allocation4]  }
  0x37   : > { %p4397_p12 = pnand %p4396_p11, %p4390_p8 }
  0x39   : > { %4400 = shalt.err (!%p4397_p12)
}
  0x3a   : > { %s5780_s6 = sld [smem:[#allocation39_spill]]  ;;  %s4412_s23 = scalar_lea.vmem %s4913_s5, 16 }
  0x3b   : > { %p4413_p13 = scmp.ne.s32.totalorder %s4913_s5, %s4412_s23  ;;  %s4419_s20 = scalar_lea.vmem %s4913_s5, 32 }
  0x3c   : > { %p4420_p5 = scmp.lt.s32.totalorder %s4913_s5, %s4913_s5  ;;  %p4421_p8 = scmp.lt.s32.totalorder %s4419_s20, %s4412_s23 }
  0x3d   : > { %p4415_p0 = pnand %p4413_p13, %p4919_p7 }
  0x3e   : > { %p4422_p9 = por %p4421_p8, %p4420_p5 }
  0x3f   : > { %p4416_p2 = pneg %p4415_p0 }
  0x40   : > { %4017 = dma.hbm_to_vmem [thread:$0]  (!%p4909_p6), %s5780_s6, 16, %s4905_s30, [#allocation8]  }
  0x41   : > { %p4423_p10 = pnand %p4422_p9, %p4416_p2 }
  0x43   : > { %4426 = shalt.err (!%p4423_p10)
}
  0x44   : > { %s5781_s11 = sld [smem:[#allocation43_spill]]  ;;  %s4438_s30 = scalar_lea.vmem %s733_s1, 1024 }
  0x45   : > { %p4439_p11 = scmp.ne.s32.totalorder %s733_s1, %s4438_s30  ;;  %p4446_p0 = scmp.lt.s32.totalorder %s733_s1, %s733_s1 }
  0x46   : > { %p4447_p3 = scmp.lt.s32.totalorder %s4438_s30, %s4438_s30 }
  0x47   : > { %p4441_p12 = pnand %p4439_p11, %p4919_p7 }
  0x48   : > { %p4448_p5 = por %p4447_p3, %p4446_p0 }
  0x49   : > { %p4442_p13 = pneg %p4441_p12 }
  0x4a   : > { %4023 = dma.hbm_to_vmem [thread:$0]  (!%p4909_p6), %s5781_s11, 16, %s4913_s5, [#allocation11]  }
  0x4b   : > { %p4449_p2 = pnand %p4448_p5, %p4442_p13 }
  0x4d   : > { %4452 = shalt.err (!%p4449_p2)
}
  0x4e   : > { %s4719_s26 = smov 64   ;;  %s4720_s5 = smov 4  }
  0x4f   : > { %s5782_s14 = sld [smem:[#allocation44_spill]]  ;;  %s4965_s23 = sadd.s32 1, %s4713_s28  }
  0x50   : > { %5783 = sst [smem:[#allocation30_spill]] %s4965_s23  ;;  %s497_s20 = sadd.s32 1, %s4709_s7 }
  0x51   : > { %s494_s4 = ssub.s32 %s4713_s28, %s4965_s23  ;;  %p504_p3 = scmp.ne.s32.totalorder %s4709_s7, %s4705_s3 }
  0x52   : > { %p495_p8 = scmp.eq.s32.totalorder %s494_s4, 0  ;;  %p505_p9 = scmp.eq.s32.totalorder %s4713_s28, 0 }
  0x53   : > { %p510_p10 = scmp.ne.s32.totalorder %s4705_s3, %s4701_s27  ;;  %p4051_p11 = scmp.lt.s32.totalorder %s4713_s28, 3 }
  0x54   : > { %s4977_s9 = scalar_select %p495_p8, %s4709_s7, %s497_s20  }
  0x55   : > { %4029 = dma.hbm_to_vmem [thread:$0]  (!%p4909_p6), %s5782_s14, 1024, %s733_s1, [#allocation14], %s4719_s26, %s4719_s26, %s4720_s5  }
  0x56   : > { %5784 = sst [smem:[#allocation31_spill]] %s4977_s9  ;;  %p506_p12 = por %p505_p9, %p504_p3 }
  0x57   : > { %p4981_p13 = por %p5746_p1, %p510_p10  ;;  %s788_s2 = sand.u32 1, %s4713_s28  }
  0x58   : > { %s5745_s1 = sand.u32 1, %s4709_s7   ;;  %s3665_s5 = sshll.u32 %s4713_s28, 12 }
  0x59   : > { %s5785_s30 = scalar_select %p4981_p13, 1, 0 }
  0x5a   : > { %s3458_s26 = sshll.u32 %s5745_s1, 8  ;;  %s5786_s21 = sld [smem:[#allocation47_spill]] }
  0x5b   : > { %s792_s27 = scalar_lea.vmem [#allocation18], %s3458_s26  ;;  %p4997_p0 = pnand %p4051_p11, %p506_p12 }
  0x5c   : > { %s799_s20 = sshll.u32 %s792_s27, 4  ;;  %s5001_s1 = scalar_lea.sflag [#allocation4], %s788_s2  ;;  %s4995_s20 = int_to_ptr.vmem [resolvable:$true] %s799_s20 }
  0x5d   : > { %p5754_p2 = pneg %p4997_p0 }
  0x60   : > { %s4993_s4 = scalar_lea.hbm %s5786_s21, %s3665_s5  ;;  %s4458_s5 = scalar_lea.hbm %s5786_s21, 12288 }
  0x61   : > { %s4453_s9 = scalar_lea.hbm %s4993_s4, 4096  ;;  %p4459_p9 = scmp.lt.s32.totalorder %s4993_s4, %s5786_s21 }
  0x62   : > { %p4454_p5 = scmp.ne.s32.totalorder %s4993_s4, %s4453_s9  ;;  %p4460_p10 = scmp.lt.s32.totalorder %s4458_s5, %s4453_s9 }
  0x64   : > { %p4456_p3 = pnand %p5754_p2, %p4454_p5  ;;  %p4461_p11 = por %p4460_p10, %p4459_p9 }
  0x66   : > { %p4457_p8 = pneg %p4456_p3 }
  0x68   : > { %p4462_p12 = pnand %p4461_p11, %p4457_p8 }
  0x6a   : > { %4465 = shalt.err (!%p4462_p12)
}
  0x6b   : > { %s4466_s2 = scalar_lea.vmem %s4995_s20, 4096  ;;  %s4721_s11 = smov [#allocation18]  }
  0x6c   : > { %p4467_p1 = scmp.ne.s32.totalorder %s4995_s20, %s4466_s2  ;;  %s4471_s26 = sshll.u32 %s4721_s11, 4  ;;  %s4472_s26 = int_to_ptr.vmem [resolvable:$false] %s4471_s26 }
  0x6d   : > { %s4473_s23 = scalar_lea.vmem %s4472_s26, 8192  ;;  %p4474_p13 = scmp.lt.s32.totalorder %s4995_s20, %s4472_s26 }
  0x6e   : > { %p4469_p5 = pnand %p4467_p1, %p5754_p2  ;;  %p4475_p4 = scmp.lt.s32.totalorder %s4473_s23, %s4466_s2 }
  0x70   : > { %p4470_p3 = pneg %p4469_p5  ;;  %p4476_p6 = por %p4475_p4, %p4474_p13 }
  0x72   : > { %p4477_p9 = pnand %p4476_p6, %p4470_p3 }
  0x74   : > { %4480 = shalt.err (!%p4477_p9)
}
  0x75   : > { %s4722_s9 = smov 256   ;;  %s4723_s5 = smov 16  }
  0x76   : > { %4039 = dma.hbm_to_vmem [thread:$0]  (!%p4997_p0), %s4993_s4, 4096, %s4995_s20, %s5001_s1, %s4722_s9, %s4722_s9, %s4723_s5  }
  0x77   : > { %s4724_s6 = smov [#allocation9]   ;;  %s4725_s11 = smov [#allocation12]  }
  0x78   : > { %s694_s27 = sshll.u32 %s4724_s6, 4  ;;  %s722_s21 = sshll.u32 %s4725_s11, 4  ;;  %s695_s27 = int_to_ptr.vmem [resolvable:$true] %s694_s27  ;;  %s723_s21 = int_to_ptr.vmem [resolvable:$true] %s722_s21 }
  0x79   : > { %s4492_s18 = scalar_lea.vmem %s695_s27, 16  ;;  %s4499_s23 = scalar_lea.vmem %s695_s27, 32 }
  0x7a   : > { %p4493_p1 = scmp.ne.s32.totalorder %s695_s27, %s4492_s18  ;;  %p4500_p13 = scmp.lt.s32.totalorder %s695_s27, %s695_s27 }
  0x7b   : > { %p4501_p8 = scmp.lt.s32.totalorder %s4499_s23, %s4492_s18 }
  0x7c   : > { %p4495_p4 = pnand %p4493_p1, %p4919_p7 }
  0x7d   : > { %p4502_p10 = por %p4501_p8, %p4500_p13 }
  0x7e   : > { %p4496_p6 = pneg %p4495_p4 }
  0x80   : > { %p4503_p11 = pnand %p4502_p10, %p4496_p6 }
  0x82   : > { %4506 = shalt.err (!%p4503_p11)
}
  0x83   : > { %p5788_p12 = scmp.ne.s32.totalorder %s5777_s10, 0  ;;  %s5789_s20 = sld [smem:[#allocation41_spill]] }
  0x84   : > { %s4518_s26 = scalar_lea.vmem %s723_s21, 16  ;;  %s4525_s9 = scalar_lea.vmem %s723_s21, 32 }
  0x85   : > { %p4519_p5 = scmp.ne.s32.totalorder %s723_s21, %s4518_s26  ;;  %p4526_p1 = scmp.lt.s32.totalorder %s723_s21, %s723_s21 }
  0x86   : > { %p4527_p4 = scmp.lt.s32.totalorder %s4525_s9, %s4518_s26 }
  0x87   : > { %p4521_p3 = pnand %p4519_p5, %p4919_p7 }
  0x88   : > { %p4528_p2 = por %p4527_p4, %p4526_p1 }
  0x89   : > { %4020 = dma.hbm_to_vmem [thread:$0]  (!%p5788_p12), %s5789_s20, 16, %s695_s27, [#allocation8]  }
  0x8a   : > { %p4522_p9 = pneg %p4521_p3 }
  0x8c   : > { %p4529_p13 = pnand %p4528_p2, %p4522_p9 }
  0x8e   : > { %4532 = shalt.err (!%p4529_p13)
}
  0x8f   : > { %4026 = dma.hbm_to_vmem [thread:$0]  (!%p5788_p12), %s5724_s13, 16, %s723_s21, [#allocation11]  }
  0x90   : > { %s4726_s6 = smov [#allocation15]   ;;  %s4727_s11 = smov [#allocation16]  }
  0x91   : > { %s746_s27 = sshll.u32 %s4726_s6, 4  ;;  %s766_s23 = sshll.u32 %s4727_s11, 4  ;;  %s747_s27 = int_to_ptr.vmem [resolvable:$true] %s746_s27  ;;  %s767_s23 = int_to_ptr.vmem [resolvable:$true] %s766_s23 }
  0x92   : > { %s4544_s2 = scalar_lea.vmem %s747_s27, 16  ;;  %s4551_s4 = scalar_lea.vmem %s747_s27, 32 }
  0x93   : > { %p4545_p6 = scmp.ne.s32.totalorder %s747_s27, %s4544_s2  ;;  %p4552_p2 = scmp.lt.s32.totalorder %s747_s27, %s747_s27 }
  0x94   : > { %p4553_p11 = scmp.lt.s32.totalorder %s4551_s4, %s4544_s2 }
  0x95   : > { %p4547_p8 = pnand %p4545_p6, %p4919_p7 }
  0x96   : > { %p4554_p5 = por %p4553_p11, %p4552_p2 }
  0x97   : > { %p4548_p10 = pneg %p4547_p8 }
  0x99   : > { %p4555_p3 = pnand %p4554_p5, %p4548_p10 }
  0x9b   : > { %4558 = shalt.err (!%p4555_p3)
}
  0x9c   : > { %4032 = dma.hbm_to_vmem [thread:$0]  (!%p5788_p12), %s5726_s15, 16, %s747_s27, [#allocation14]  }
  0x9d   : > { %s5790_s26 = sand.u32 1, %s4709_s7   ;;  %s4570_s18 = scalar_lea.vmem %s767_s23, 16 }
  0x9e   : > { %s3461_s9 = sshll.u32 %s5790_s26, 2  ;;  %p4571_p9 = scmp.ne.s32.totalorder %s767_s23, %s4570_s18 }
  0x9f   : > { %s4577_s5 = scalar_lea.vmem %s767_s23, 32  ;;  %p4578_p13 = scmp.lt.s32.totalorder %s767_s23, %s767_s23 }
  0xa0   : > { %p4573_p1 = pnand %p4571_p9, %p4919_p7  ;;  %p4579_p6 = scmp.lt.s32.totalorder %s4577_s5, %s4570_s18 }
  0xa2   : > { %p4574_p4 = pneg %p4573_p1  ;;  %p4580_p8 = por %p4579_p6, %p4578_p13 }
  0xa4   : > { %p4581_p10 = pnand %p4580_p8, %p4574_p4 }
  0xa6   : > { %4584 = shalt.err (!%p4581_p10)
}
  0xa7   : > { %4035 = dma.hbm_to_vmem [thread:$0]  (!%p5788_p12), %s5730_s19, 16, %s767_s23, [#allocation17]  }
  0xa8   : > { %s3666_s27 = sshll.u32 %s4713_s28, 6  ;;  %s813_s20 = scalar_lea.vmem [#allocation19], %s3461_s9 }
  0xa9   : > { %s819_s8 = scalar_lea.hbm %s5733_s22, %s3666_s27  ;;  %s821_s21 = sshll.u32 %s813_s20, 4  ;;  %s822_s21 = int_to_ptr.vmem [resolvable:$true] %s821_s21 }
  0xaa   : > { %s4585_s26 = scalar_lea.hbm %s819_s8, 64  ;;  %p5791_p2 = pneg %p4997_p0 }
  0xab   : > { %p4586_p7 = scmp.ne.s32.totalorder %s819_s8, %s4585_s26  ;;  %s4590_s5 = scalar_lea.hbm %s5733_s22, 192 }
  0xac   : > { %p4591_p12 = scmp.lt.s32.totalorder %s819_s8, %s5733_s22  ;;  %p4592_p3 = scmp.lt.s32.totalorder %s4590_s5, %s4585_s26 }
  0xad   : > { %p4588_p11 = pnand %p4586_p7, %p5791_p2 }
  0xae   : > { %p4593_p9 = por %p4592_p3, %p4591_p12 }
  0xaf   : > { %p4589_p5 = pneg %p4588_p11 }
  0xb1   : > { %p4594_p1 = pnand %p4593_p9, %p4589_p5 }
  0xb3   : > { %4597 = shalt.err (!%p4594_p1)
}
  0xb4   : > { %s4598_s9 = scalar_lea.vmem %s822_s21, 64  ;;  %p5792_p13 = pmov %p5791_p2 }
  0xb5   : > { %p4599_p4 = scmp.ne.s32.totalorder %s822_s21, %s4598_s9  ;;  %s4728_s11 = smov [#allocation19]  }
  0xb6   : > { %s4603_s27 = sshll.u32 %s4728_s11, 4  ;;  %s4604_s27 = int_to_ptr.vmem [resolvable:$false] %s4603_s27 }
  0xb7   : > { %p4601_p6 = pnand %p4599_p4, %p5792_p13  ;;  %s4605_s2 = scalar_lea.vmem %s4604_s27, 128 }
  0xb8   : > { %p4606_p10 = scmp.lt.s32.totalorder %s822_s21, %s4604_s27  ;;  %p4607_p7 = scmp.lt.s32.totalorder %s4605_s2, %s4598_s9 }
  0xb9   : > { %p4602_p8 = pneg %p4601_p6 }
  0xba   : > { %p4608_p2 = por %p4607_p7, %p4606_p10 }
  0xbc   : > { %p4609_p11 = pnand %p4608_p2, %p4602_p8 }
  0xbe   : > { %4612 = shalt.err (!%p4609_p11)
}
  0xbf   : > { %4042 = dma.hbm_to_vmem [thread:$0]  (!%p4997_p0), %s819_s8, 64, %s822_s21, %s5001_s1  }
  0xc0   : > { %p5793_p5 = scmp.ne.s32.totalorder %s5776_s0, 0 }
  0xc1   : > { %p5794_p12 = scmp.eq.s32.totalorder (!%p5793_p5), %s4893_s29, 0 }
  0xc2   : > { %830 = sbr.rel (%p5793_p5) target bundleno = 2781 (0xadd), region = 112 }
  0xc7   : > { %4668 = dma.done.wait (%p5794_p12), [#allocation4], 16   ;;  %p5795_p3 = pmov %p5794_p12 }
  0xc9   : > { %4670 = vsyncadd (%p5795_p3), [#allocation4], 4294967280  ;;  %p5796_p9 = pmov %p5795_p3 }
  0xca   : > { %p5797_p1 = pmov %p5795_p3 }
  0xcb   : > { %4672 = dma.done.wait (%p5796_p9), [#allocation8], 32  }
  0xcc   : > { %4674 = vsyncadd (%p5797_p1), [#allocation8], 4294967264  ;;  %p5798_p4 = pmov %p5797_p1 }
  0xcd   : > { %p5799_p0 = pmov %p5797_p1 }
  0xce   : > { %4676 = dma.done.wait (%p5798_p4), [#allocation11], 32  }
  0xcf   : > { %4678 = vsyncadd (%p5799_p0), [#allocation11], 4294967264  ;;  %p5800_p13 = pmov %p5799_p0 }
  0xd0   : > { %p5801_p6 = pmov %p5799_p0 }
  0xd1   : > { %4680 = dma.done.wait (%p5800_p13), [#allocation14], 1040  }
  0xd2   : > { %4682 = vsyncadd (%p5801_p6), [#allocation14], 4294966256  ;;  %p5802_p8 = pmov %p5799_p0 }
  0xd3   : > { %p5803_p10 = pmov %p5799_p0 }
  0xd4   : > { %4684 = dma.done.wait (%p5802_p8), [#allocation17], 16  }
  0xd5   : > { %4686 = vsyncadd (%p5803_p10), [#allocation17], 4294967280  ;;  %s864_s14 = sand.u32 1, %s4893_s29   ;;  %s866_s0 = sand.u32 1, %s4705_s3  }
  0xd6   : > { %s3473_s1 = sshll.u32 %s866_s0, 8  ;;  %s865_s4 = scalar_lea.sflag [#allocation4], %s864_s14 }
  0xd7   : > { %s5101_s8 = scalar_lea.vmem [#allocation18], %s3473_s1  ;;  %p5804_p7 = scmp.ne.s32.totalorder %s5785_s30, 0 }
  0xd9   : > { %4688 = dma.done.wait (%p5804_p7), %s865_s4, 4160  }
  0xda   : > { %4690 = vsyncadd (%p5804_p7), %s865_s4, 4294963136  ;;  %s5107_s20 = sshll.u32 %s866_s0, 2  ;;  %p961_p2 = scmp.lt.s32.totalorder %s4893_s29, 2 }
  0xdb   : > { %s5805_s6 = sld [smem:[#allocation35_spill]]  ;;  %p5806_p11 = scmp.ne.s32.totalorder %s4893_s29, 0 }
  0xdc   : > { %s962_s21 = scalar_select %p961_p2, %s4893_s29, 2 }
  0xdd   : > { %980 = sbr.rel (%p5806_p11) target bundleno = 1770 (0x6ea), region = 156  ;;  %s5808_s18 = sld [smem:[#allocation32_spill]] (!%p5806_p11) }
  0xde   : > { %s3667_s26 = sshll.u32 %s962_s21, 5  ;;  %s3668_s10 = sshll.u32 %s962_s21, 7 }
  0xdf   : > { %s5119_s27 = scalar_lea.vmem %s5735_s24, %s3668_s10  ;;  %s5124_s14 = scalar_lea.vmem %s5736_s25, %s3667_s26 }
  0xe0   : > { %s5807_s21 = sld [smem:[#allocation36_spill]] (!%p5806_p11)  ;;  %s4731_s2 = smov (!%p5806_p11), 25  }
  0xe1   : > { %s5114_s23 = scalar_lea.vmem %s5805_s6, %s3667_s26  ;;  %s5809_s0 = sld [smem:[#allocation38_spill]] (!%p5806_p11) }
  0xe2   : > { %v4729_v2 = vmov 0.0   ;;  %s5810_s4 = sld [smem:[#allocation40_spill]]  ;;  %vm4730_vm0 = vmmov 0   ;;  %v3482_v48 = vld [vmem:[#allocation3] ss:$0 sm:$0xff]  ;;  %vm2495_vm1 = vcmask 203776  }
  0xe3   : > { %3823 = vmatprep.subr.bf16.mxu1 %v4729_v2  ;;  %v981_v12 = vld [vmem:[%s5808_s18] sm:$0xff]  ;;  %3839 = vmatprep.mubr.msk.bf16.mxu1 %vm4730_vm0, %v4729_v2  ;;  %s5811_s18 = sld [smem:[#allocation33_spill]]  ;;  %s4732_s1 = smov 103  }
  0xe4   : > { %v3484_v13 = vcombine.high %v981_v12, %v981_v12  ;;  %v3483_v25 = vcombine.low %v981_v12, %v981_v12  ;;  %s5812_s6 = sld [smem:[#allocation42_spill]] }
  0xe5   : > { %s5813_s9 = sld [smem:[#allocation34_spill]] }
  0xe6   : > { %v4116_v0 = vld [vmem:[%s5807_s21 + $0x78] sm:$0xff]   ;;  %v4118_v3 = vld [vmem:[%s5807_s21 + $0x70] sm:$0xff]   ;;  %v4120_v5 = vld [vmem:[%s5807_s21 + $0x68] sm:$0xff]   ;;  %1156 = vmatprep.mubr.bf16.mxu0 %v3484_v13 }
  0xe7   : > { %v4117_v1 = vld [vmem:[%s5807_s21 + $0x38] sm:$0xff]   ;;  %3672 = vmatprep.subr.bf16.mxu0 %v4116_v0  ;;  %v4119_v4 = vld [vmem:[%s5807_s21 + $0x30] sm:$0xff]   ;;  %v4121_v6 = vld [vmem:[%s5807_s21 + $0x28] sm:$0xff]  }
  0xe8   : > { %3673 = vmatpush3.bf16.msra.mxu0 %v4117_v1  ;;  %v4122_v7 = vld [vmem:[%s5807_s21 + $0x60] sm:$0xff]   ;;  %v4124_v9 = vld [vmem:[%s5807_s21 + $0x58] sm:$0xff]   ;;  %v4126_v11 = vld [vmem:[%s5807_s21 + $0x50] sm:$0xff]  }
  0xe9   : > { %3674 = vmatprep.subr.bf16.mxu0 %v4118_v3  ;;  %v4123_v8 = vld [vmem:[%s5807_s21 + $0x20] sm:$0xff]   ;;  %v4125_v10 = vld [vmem:[%s5807_s21 + $0x18] sm:$0xff]   ;;  %v4127_v15 = vld [vmem:[%s5807_s21 + $0x10] sm:$0xff]  }
  0xea   : > { %v4134_v14 = vld [vmem:[%s5809_s0 + $0x38] sm:$0xff]   ;;  %v4128_v16 = vld [vmem:[%s5807_s21 + $0x48] sm:$0xff]   ;;  %v4135_v17 = vld [vmem:[%s5809_s0 + $0x30] sm:$0xff]  }
  0xeb   : > { %3824 = vmatpush3.bf16.msra.mxu1 %v4134_v14  ;;  %v4129_v18 = vld [vmem:[%s5807_s21 + $0x8] sm:$0xff]   ;;  %v4130_v19 = vld [vmem:[%s5807_s21 + $0x40] sm:$0xff]   ;;  %v4139_v23 = vld [vmem:[%s5810_s4 + $0x78] sm:$0xff]  }
  0xec   : > { %3675 = vmatpush3.bf16.msra.mxu0 %v4119_v4  ;;  %3825 = vmatprep.subr.bf16.mxu1 %v4729_v2  ;;  %v4136_v20 = vld [vmem:[%s5809_s0 + $0x28] sm:$0xff]   ;;  %v4131_v21 = vld [vmem:[%s5807_s21] sm:$0xff]   ;;  %v4141_v24 = vld [vmem:[%s5810_s4 + $0x38] sm:$0xff]  }
  0xed   : > { %3676 = vmatprep.subr.bf16.mxu0 %v4120_v5  ;;  %v4137_v22 = vld [vmem:[%s5809_s0 + $0x20] sm:$0xff]   ;;  %v4138_v26 = vld [vmem:[%s5809_s0 + $0x18] sm:$0xff]   ;;  %v4140_v27 = vld [vmem:[%s5809_s0 + $0x10] sm:$0xff]  }
  0xee   : > { %v4142_v28 = vld [vmem:[%s5810_s4 + $0x70] sm:$0xff]   ;;  %v4143_v29 = vld [vmem:[%s5809_s0 + $0x8] sm:$0xff]   ;;  %v4146_v32 = vld [vmem:[%s5809_s0] sm:$0xff]  }
  0xef   : > { %3826 = vmatpush3.bf16.msra.mxu1 %v4135_v17  ;;  %v4144_v30 = vld [vmem:[%s5810_s4 + $0x30] sm:$0xff]   ;;  %v4145_v31 = vld [vmem:[%s5810_s4 + $0x68] sm:$0xff]   ;;  %v4148_v34 = vld [vmem:[%s5810_s4 + $0x60] sm:$0xff]  }
  0xf0   : > { %3677 = vmatpush3.bf16.msra.mxu0 %v4121_v6  ;;  %3827 = vmatprep.subr.bf16.mxu1 %v4729_v2  ;;  %v4147_v33 = vld [vmem:[%s5810_s4 + $0x28] sm:$0xff]   ;;  %v4149_v35 = vld [vmem:[%s5810_s4 + $0x20] sm:$0xff]   ;;  %v4151_v36 = vld [vmem:[%s5810_s4 + $0x58] sm:$0xff]  }
  0xf1   : > { %3678 = vmatprep.subr.bf16.mxu0 %v4122_v7  ;;  %v4152_v37 = vld [vmem:[%s5810_s4 + $0x18] sm:$0xff]   ;;  %v4154_v38 = vld [vmem:[%s5810_s4 + $0x50] sm:$0xff]   ;;  %v4157_v40 = vld [vmem:[%s5810_s4 + $0x48] sm:$0xff]  }
  0xf2   : > { %v4155_v39 = vld [vmem:[%s5810_s4 + $0x10] sm:$0xff]   ;;  %v4158_v41 = vld [vmem:[%s5810_s4 + $0x8] sm:$0xff]   ;;  %v4160_v42 = vld [vmem:[%s5810_s4 + $0x40] sm:$0xff]  }
  0xf3   : > { %3828 = vmatpush3.bf16.msra.mxu1 %v4136_v20  ;;  %v4161_v43 = vld [vmem:[%s5810_s4] sm:$0xff]   ;;  %v4150_v55 = vld [vmem:[%s5810_s4 + $0xb8] sm:$0xff]   ;;  %v4153_v57 = vld [vmem:[%s5810_s4 + $0xb0] sm:$0xff]  }
  0xf4   : > { %3679 = vmatpush3.bf16.msra.mxu0 %v4123_v8  ;;  %3829 = vmatprep.subr.bf16.mxu1 %v4729_v2  ;;  %v1278_v44 = vld [vmem:[%s5811_s18] sm:$0xff]  ;;  %v4156_v58 = vld [vmem:[%s5810_s4 + $0xa8] sm:$0xff]   ;;  %v4162_v60 = vld [vmem:[%s5810_s4 + $0x98] sm:$0xff]  }
  0xf5   : > { %3680 = vmatprep.subr.bf16.mxu0 %v4124_v9  ;;  %v3511_v45 = vcombine.low %v1278_v44, %v1278_v44  ;;  %v3512_v46 = vcombine.high %v1278_v44, %v1278_v44  ;;  %v4159_v59 = vld [vmem:[%s5810_s4 + $0xa0] sm:$0xff]   ;;  %v4165_v61 = vld [vmem:[%s5810_s4 + $0x90] sm:$0xff]   ;;  %v4166_v62 = vld [vmem:[%s5810_s4 + $0x88] sm:$0xff]  }
  0xf6   : > { %v4167_v63 = vld [vmem:[%s5810_s4 + $0x80] sm:$0xff]   ;;  %v4168_v0 = vld [vmem:[%s5811_s18 + $0x8] ss:$0 sps:$4 sm:$0xff]   ;;  %v4169_v1 = vld [vmem:[%s5812_s6 + $0x38] sm:$0xff]  }
  0xf7   : > { %3830 = vmatpush3.bf16.msra.mxu1 %v4137_v22  ;;  %v4170_v3 = vld [vmem:[%s5812_s6 + $0x30] sm:$0xff]   ;;  %v4175_v4 = vld [vmem:[%s5723_s12 + $0x78] sm:$0xff]   ;;  %v4171_v6 = vld [vmem:[%s5812_s6 + $0x28] sm:$0xff]  }
  0xf8   : > { %3681 = vmatpush3.bf16.msra.mxu0 %v4125_v10  ;;  %3831 = vmatprep.subr.bf16.mxu1 %v4729_v2  ;;  %v4177_v5 = vld [vmem:[%s5723_s12 + $0x38] sm:$0xff]   ;;  %v4172_v7 = vld [vmem:[%s5812_s6 + $0x20] sm:$0xff]   ;;  %v4174_v12 = vld [vmem:[%s5812_s6 + $0x10] sm:$0xff]  }
  0xf9   : > { %3682 = vmatprep.subr.bf16.mxu0 %v4126_v11  ;;  %v4173_v8 = vld [vmem:[%s5812_s6 + $0x18] sm:$0xff]   ;;  %v4179_v17 = vld [vmem:[%s5812_s6] sm:$0xff]  }
  0xfa   : > { %v4182_v20 = vld [vmem:[%s5723_s12 + $0xf8] sm:$0xff]   ;;  %v4185_v22 = vld [vmem:[%s5723_s12 + $0x60] sm:$0xff]  }
  0xfb   : > { %3832 = vmatpush3.bf16.msra.mxu1 %v4138_v26  ;;  %v4193_v26 = vld [vmem:[%s5723_s12 + $0x50] sm:$0xff]  }
  0xfc   : > { %3683 = vmatpush3.bf16.msra.mxu0 %v4127_v15  ;;  %3833 = vmatprep.subr.bf16.mxu1 %v4729_v2  ;;  %v4176_v15 = vld [vmem:[%s5812_s6 + $0x8] sm:$0xff]   ;;  %s5814_s6 = sld [smem:[#allocation45_spill]] }
  0xfd   : > { %3684 = vmatprep.subr.bf16.mxu0 %v4128_v16  ;;  %v4178_v16 = vld [vmem:[%s5723_s12 + $0x70] sm:$0xff]  }
  0xff   : > { %3834 = vmatpush3.bf16.msra.mxu1 %v4140_v27  ;;  %v4195_v27 = vld [vmem:[%s5723_s12 + $0x10] sm:$0xff]  }
 0x100   : > { %3685 = vmatpush3.bf16.msra.mxu0 %v4129_v18  ;;  %3835 = vmatprep.subr.bf16.mxu1 %v4729_v2  ;;  %v4180_v18 = vld [vmem:[%s5723_s12 + $0x30] sm:$0xff]  }
 0x101   : > { %3686 = vmatprep.subr.bf16.mxu0 %v4130_v19  ;;  %v4181_v19 = vld [vmem:[%s5723_s12 + $0x68] sm:$0xff]  }
 0x103   : > { %3836 = vmatpush3.bf16.msra.mxu1 %v4143_v29  ;;  %v4199_v29 = vld [vmem:[%s5723_s12 + $0x8] sm:$0xff]  }
 0x104   : > { %3687 = vmatpush3.bf16.msra.mxu0 %v4131_v21  ;;  %3837 = vmatprep.subr.bf16.mxu1 %v4729_v2  ;;  %v4183_v21 = vld [vmem:[%s5723_s12 + $0x28] sm:$0xff]  }
 0x105   : > { %3703 = vmatprep.subr.bf16.mxu0 %v4139_v23  ;;  %v4187_v23 = vld [vmem:[%s5723_s12 + $0x20] sm:$0xff]  }
 0x107   : > { %1157 = vmatmul.mubr.bf16.vlgmr.msra.gmra.mxu0 %v3483_v25  ;;  %3838 = vmatpush3.bf16.msra.mxu1 %v4146_v32  ;;  %v4191_v25 = vld [vmem:[%s5723_s12 + $0x18] sm:$0xff]   ;;  %v1684_v32 = vld [vmem:[%s5813_s9] sm:$0xff] }
 0x108   : > { %3704 = vmatpush3.bf16.msra.mxu0 %v4141_v24  ;;  %3843 = vmatprep.subr.bf16.mxu1 %v4729_v2  ;;  %v4189_v24 = vld [vmem:[%s5723_s12 + $0x58] sm:$0xff]  }
 0x109   : > { %3705 = vmatprep.subr.bf16.mxu0 %v4142_v28  ;;  %1522 = vmatprep.mubr.bf16.mxu0 %v3512_v46  ;;  %v4197_v28 = vld [vmem:[%s5723_s12 + $0x48] sm:$0xff]  }
 0x10c   : > { %3706 = vmatpush3.bf16.msra.mxu0 %v4144_v30  ;;  %v4201_v30 = vld [vmem:[%s5723_s12 + $0x40] sm:$0xff]  }
 0x10d   : > { %3707 = vmatprep.subr.bf16.mxu0 %v4145_v31  ;;  %v4203_v31 = vld [vmem:[%s5723_s12] sm:$0xff]  }
 0x110   : > { %3708 = vmatpush3.bf16.msra.mxu0 %v4147_v33  ;;  %v3548_v33 = vcombine.low %v1684_v32, %v1684_v32 }
 0x111   : > { %3709 = vmatprep.subr.bf16.mxu0 %v4148_v34  ;;  %v3549_v34 = vcombine.high %v1684_v32, %v1684_v32  ;;  %v3547_v32 = vld [vmem:[#allocation12] ss:$0 sm:$0xff] }
 0x114   : > { %3710 = vmatpush3.bf16.msra.mxu0 %v4149_v35 }
 0x115   : > { %3711 = vmatprep.subr.bf16.mxu0 %v4151_v36 }
 0x118   : > { %3712 = vmatpush3.bf16.msra.mxu0 %v4152_v37 }
 0x119   : > { %3713 = vmatprep.subr.bf16.mxu0 %v4154_v38 }
 0x11c   : > { %3714 = vmatpush3.bf16.msra.mxu0 %v4155_v39  ;;  %v3510_v39 = vld [vmem:[#allocation9] ss:$0 sm:$0xff] }
 0x11d   : > { %3715 = vmatprep.subr.bf16.mxu0 %v4157_v40 }
 0x120   : > { %3716 = vmatpush3.bf16.msra.mxu0 %v4158_v41 }
 0x121   : > { %3717 = vmatprep.subr.bf16.mxu0 %v4160_v42 }
 0x124   : > { %3718 = vmatpush3.bf16.msra.mxu0 %v4161_v43  ;;  %v1685_v43 = vld [vmem:[%s5813_s9 + $0x8] sm:$0xff] }
 0x125   : > { %3863 = vmatprep.subr.bf16.mxu0 %v4729_v2 }
 0x127   : > { %1523 = vmatmul.mubr.bf16.vlgmr.msra.gmra.mxu0 %v3511_v45 }
 0x128   : > { %3879 = vmatprep.mubr.msk.bf16.mxu0 %vm4730_vm0, %v4729_v2  ;;  %3864 = vmatpush3.bf16.msra.mxu0 %v4169_v1  ;;  %v3550_v1 = vcombine.low %v1685_v43, %v1685_v43 }
 0x129   : > { %3865 = vmatprep.subr.bf16.mxu0 %v4729_v2 }
 0x12c   : > { %3866 = vmatpush3.bf16.msra.mxu0 %v4170_v3  ;;  %v4213_v3 = vld [vmem:[%s5728_s17 + $0x38] sm:$0xff]  }
 0x12d   : > { %3867 = vmatprep.subr.bf16.mxu0 %v4729_v2 }
 0x130   : > { %3868 = vmatpush3.bf16.msra.mxu0 %v4171_v6  ;;  %v4216_v6 = vld [vmem:[%s5728_s17 + $0x20] sm:$0xff]  }
 0x131   : > { %3869 = vmatprep.subr.bf16.mxu0 %v4729_v2 }
 0x134   : > { %3870 = vmatpush3.bf16.msra.mxu0 %v4172_v7  ;;  %v4217_v7 = vld [vmem:[%s5728_s17 + $0x18] sm:$0xff]  }
 0x135   : > { %3871 = vmatprep.subr.bf16.mxu0 %v4729_v2 }
 0x138   : > { %3872 = vmatpush3.bf16.msra.mxu0 %v4173_v8  ;;  %v4218_v8 = vld [vmem:[%s5728_s17 + $0x10] sm:$0xff]  }
 0x139   : > { %3873 = vmatprep.subr.bf16.mxu0 %v4729_v2 }
 0x13c   : > { %3874 = vmatpush3.bf16.msra.mxu0 %v4174_v12  ;;  %v4222_v12 = vld [vmem:[#allocation13 + $0x30] sm:$0xff]  }
 0x13d   : > { %3875 = vmatprep.subr.bf16.mxu0 %v4729_v2 }
 0x140   : > { %3876 = vmatpush3.bf16.msra.mxu0 %v4176_v15  ;;  %v4225_v15 = vld [vmem:[#allocation13 + $0x18] sm:$0xff]  }
 0x141   : > { %3877 = vmatprep.subr.bf16.mxu0 %v4729_v2 }
 0x144   : > { %3878 = vmatpush3.bf16.msra.mxu0 %v4179_v17  ;;  %v4226_v17 = vld [vmem:[#allocation13 + $0x10] sm:$0xff]  }
 0x145   : > { %3765 = vmatprep.subr.bf16.mxu0 %v4182_v20 }
 0x1c7   : > { %v3688_v47 = vpop.f32.mrf.mxu0 }
 0x1c9   : > { %v3689_v49 = vpop.f32.mrf.mxu0 }
 0x1ca   : > { %v3690_v50 = vadd.f32 %v3689_v49, %v3688_v47  ;;  %v4184_v47 = vld [vmem:[%s5723_s12 + $0xb8] sm:$0xff]  }
 0x1cb   : > { %v3691_v51 = vpop.f32.mrf.mxu0 }
 0x1cc   : > { %v1159_v52 = vadd.f32 %v3690_v50, %v3482_v48  ;;  %v3551_v48 = vcombine.high %v1685_v43, %v1685_v43  ;;  %v4186_v50 = vld [vmem:[%s5723_s12 + $0xf0] sm:$0xff]  }
 0x1cd   : > { %v3692_v53 = vpop.f32.mrf.mxu0 }
 0x1ce   : > { %v1164_v54 = vmax.f32 %v1159_v52, 0.0  ;;  %v4188_v52 = vld [vmem:[%s5723_s12 + $0xb0] sm:$0xff]   ;;  %v4190_v53 = vld [vmem:[%s5723_s12 + $0xe8] sm:$0xff]  }
 0x1d0   : > { %v1165_v56 = vpack.c.bf16 %v1164_v54, %v1164_v54  ;;  %v4192_v54 = vld [vmem:[%s5723_s12 + $0xa8] sm:$0xff]  }
 0x1d2   : > { %3840 = vmatmul.mubr.bf16.vlgmr.msra.gmra.mxu1 %v1165_v56  ;;  %v4196_v56 = vld [vmem:[%s5723_s12 + $0xa0] sm:$0xff]  }
 0x1d3   : > { %3844 = vmatpush3.bf16.msra.mxu1 %v4150_v55  ;;  %3859 = vmatprep.mubr.msk.bf16.mxu1 %vm4730_vm0, %v4729_v2  ;;  %v4194_v55 = vld [vmem:[%s5723_s12 + $0xe0] sm:$0xff]  }
 0x1d4   : > { %3845 = vmatprep.subr.bf16.mxu1 %v4729_v2 }
 0x1d7   : > { %3846 = vmatpush3.bf16.msra.mxu1 %v4153_v57  ;;  %v4198_v57 = vld [vmem:[%s5723_s12 + $0xd8] sm:$0xff]  }
 0x1d8   : > { %3847 = vmatprep.subr.bf16.mxu1 %v4729_v2 }
 0x1db   : > { %3848 = vmatpush3.bf16.msra.mxu1 %v4156_v58  ;;  %v4200_v58 = vld [vmem:[%s5723_s12 + $0x98] sm:$0xff]  }
 0x1dc   : > { %3849 = vmatprep.subr.bf16.mxu1 %v4729_v2 }
 0x1df   : > { %3850 = vmatpush3.bf16.msra.mxu1 %v4159_v59  ;;  %v4202_v59 = vld [vmem:[%s5723_s12 + $0xd0] sm:$0xff]  }
 0x1e0   : > { %3851 = vmatprep.subr.bf16.mxu1 %v4729_v2 }
 0x1e3   : > { %3852 = vmatpush3.bf16.msra.mxu1 %v4162_v60  ;;  %v4204_v60 = vld [vmem:[%s5723_s12 + $0x90] sm:$0xff]  }
 0x1e4   : > { %3853 = vmatprep.subr.bf16.mxu1 %v4729_v2 }
 0x1e7   : > { %3854 = vmatpush3.bf16.msra.mxu1 %v4165_v61  ;;  %v3719_v9 = vpop.f32.mrf.mxu0  ;;  %v4207_v61 = vld [vmem:[%s5723_s12 + $0xc8] sm:$0xff]  }
 0x1e8   : > { %3855 = vmatprep.subr.bf16.mxu1 %v4729_v2 }
 0x1e9   : > { %v3720_v10 = vpop.f32.mrf.mxu0 }
 0x1ea   : > { %v3721_v11 = vadd.f32 %v3720_v10, %v3719_v9  ;;  %v4219_v9 = vld [vmem:[%s5728_s17 + $0x8] sm:$0xff]   ;;  %v4220_v10 = vld [vmem:[%s5728_s17] sm:$0xff]  }
 0x1eb   : > { %3856 = vmatpush3.bf16.msra.mxu1 %v4166_v62  ;;  %v3722_v13 = vpop.f32.mrf.mxu0  ;;  %v4208_v62 = vld [vmem:[%s5723_s12 + $0x88] sm:$0xff]  }
 0x1ec   : > { %3857 = vmatprep.subr.bf16.mxu1 %v4729_v2  ;;  %v1525_v40 = vadd.f32 %v3721_v11, %v3510_v39  ;;  %v4221_v11 = vld [vmem:[#allocation13 + $0x38] sm:$0xff]   ;;  %v4223_v13 = vld [vmem:[#allocation13 + $0x28] sm:$0xff]  }
 0x1ed   : > { %v3723_v14 = vpop.f32.mrf.mxu0 }
 0x1ee   : > { %v4224_v14 = vld [vmem:[#allocation13 + $0x20] sm:$0xff]  }
 0x1ef   : > { %3858 = vmatpush3.bf16.msra.mxu1 %v4167_v63  ;;  %v4209_v63 = vld [vmem:[%s5723_s12 + $0xc0] sm:$0xff]  }
 0x1f0   : > { %3743 = vmatprep.subr.bf16.mxu1 %v4175_v4  ;;  %v4214_v4 = vld [vmem:[%s5728_s17 + $0x30] sm:$0xff]  }
 0x1f2   : > { %3860 = vmatmul.mubr.bf16.vlgmr.msra.gmra.mxu1 %v4168_v0  ;;  %v4210_v0 = vld [vmem:[%s5723_s12 + $0x80] sm:$0xff]  }
 0x1f3   : > { %3744 = vmatpush3.bf16.msra.mxu1 %v4177_v5  ;;  %1995 = vmatprep.mubr.bf16.mxu1 %v3549_v34  ;;  %v4215_v5 = vld [vmem:[%s5728_s17 + $0x28] sm:$0xff]  }
 0x1f4   : > { %3745 = vmatprep.subr.bf16.mxu1 %v4178_v16 }
 0x1f7   : > { %3746 = vmatpush3.bf16.msra.mxu1 %v4180_v18 }
 0x1f8   : > { %3747 = vmatprep.subr.bf16.mxu1 %v4181_v19 }
 0x1fb   : > { %3748 = vmatpush3.bf16.msra.mxu1 %v4183_v21 }
 0x1fc   : > { %3749 = vmatprep.subr.bf16.mxu1 %v4185_v22  ;;  %v4227_v22 = vld [vmem:[#allocation13 + $0x8] sm:$0xff]  }
 0x1ff   : > { %3750 = vmatpush3.bf16.msra.mxu1 %v4187_v23  ;;  %v4228_v23 = vld [vmem:[#allocation13] sm:$0xff]  }
 0x200   : > { %3751 = vmatprep.subr.bf16.mxu1 %v4189_v24  ;;  %v3538_v24 = vld [vmem:[#allocation10] ss:$0 sm:$0xff] }
 0x203   : > { %3752 = vmatpush3.bf16.msra.mxu1 %v4191_v25 }
 0x204   : > { %3753 = vmatprep.subr.bf16.mxu1 %v4193_v26 }
 0x207   : > { %3754 = vmatpush3.bf16.msra.mxu1 %v4195_v27 }
 0x208   : > { %3755 = vmatprep.subr.bf16.mxu1 %v4197_v28 }
 0x20b   : > { %3756 = vmatpush3.bf16.msra.mxu1 %v4199_v29 }
 0x20c   : > { %3757 = vmatprep.subr.bf16.mxu1 %v4201_v30 }
 0x20f   : > { %3758 = vmatpush3.bf16.msra.mxu1 %v4203_v31 }
 0x210   : > { %3883 = vmatprep.subr.bf16.mxu1 %v4729_v2 }
 0x212   : > { %1996 = vmatmul.mubr.bf16.vlgmr.msra.gmra.mxu1 %v3548_v33 }
 0x213   : > { %3899 = vmatprep.mubr.msk.bf16.mxu1 %vm4730_vm0, %v4729_v2  ;;  %3884 = vmatpush3.bf16.msra.mxu1 %v4221_v11 }
 0x214   : > { %3885 = vmatprep.subr.bf16.mxu1 %v4729_v2 }
 0x217   : > { %3886 = vmatpush3.bf16.msra.mxu1 %v4222_v12 }
 0x218   : > { %3887 = vmatprep.subr.bf16.mxu1 %v4729_v2 }
 0x21b   : > { %3888 = vmatpush3.bf16.msra.mxu1 %v4223_v13 }
 0x21c   : > { %3889 = vmatprep.subr.bf16.mxu1 %v4729_v2 }
 0x21f   : > { %3890 = vmatpush3.bf16.msra.mxu1 %v4224_v14 }
 0x220   : > { %3891 = vmatprep.subr.bf16.mxu1 %v4729_v2 }
 0x223   : > { %3892 = vmatpush3.bf16.msra.mxu1 %v4225_v15 }
 0x224   : > { %3893 = vmatprep.subr.bf16.mxu1 %v4729_v2 }
 0x227   : > { %3894 = vmatpush3.bf16.msra.mxu1 %v4226_v17 }
 0x228   : > { %3895 = vmatprep.subr.bf16.mxu1 %v4729_v2 }
 0x22b   : > { %3896 = vmatpush3.bf16.msra.mxu1 %v4227_v22 }
 0x22c   : > { %3897 = vmatprep.subr.bf16.mxu1 %v4729_v2 }
 0x22f   : > { %3898 = vmatpush3.bf16.msra.mxu1 %v4228_v23 }
 0x230   : > { %3923 = vmatprep.subr.bf16.mxu1 %v4729_v2 }
 0x292   : > { %v5393_v35 = vpop.f32.mrf.mxu1 }
 0x294   : > { %v3841_v36 = vpop.f32.mrf.mxu1 }
 0x296   : > { %v1274_v37 = vpop.f32.mrf.mxu1 }
 0x298   : > { %v3842_v38 = vpop.f32.mrf.mxu1 }
 0x2b2   : > { %v1564_v41 = vpop.f32.mrf.mxu1 }
 0x2b3   : > { %v1565_v42 = vadd.f32 %v1564_v41, %v1525_v40 }
 0x2b4   : > { %v3861_v44 = vpop.f32.mrf.mxu1 }
 0x2b5   : > { %v1570_v45 = vmax.f32 %v1565_v42, 0.0  ;;  %v4229_v42 = vld [vmem:[%s5727_s16 + $0x38] sm:$0xff]   ;;  %v4230_v44 = vld [vmem:[%s5727_s16 + $0x30] sm:$0xff]  }
 0x2b6   : > { %v1567_v46 = vpop.f32.mrf.mxu1 }
 0x2b7   : > { %v1571_v49 = vpack.c.bf16 %v1570_v45, %v1570_v45  ;;  %v4231_v45 = vld [vmem:[%s5727_s16 + $0x28] sm:$0xff]   ;;  %v4232_v46 = vld [vmem:[%s5727_s16 + $0x20] sm:$0xff]  }
 0x2b8   : > { %v3862_v51 = vpop.f32.mrf.mxu1 }
 0x2b9   : > { %3880 = vmatmul.mubr.bf16.vlgmr.msra.gmra.mxu0 %v1571_v49  ;;  %v3501_v49 = vld [vmem:[#allocation7] ss:$0 sm:$0xff] }
 0x2ba   : > { %3766 = vmatpush3.bf16.msra.mxu0 %v4184_v47  ;;  %2035 = vmatprep.mubr.bf16.mxu0 %v3551_v48  ;;  %v4233_v47 = vld [vmem:[%s5727_s16 + $0x18] sm:$0xff]   ;;  %v4234_v48 = vld [vmem:[%s5727_s16 + $0x10] sm:$0xff]   ;;  %v1272_v51 = vadd.f32 %v3501_v49, %v5393_v35 }
 0x2bb   : > { %3767 = vmatprep.subr.bf16.mxu0 %v4186_v50  ;;  %v4235_v50 = vld [vmem:[%s5727_s16 + $0x8] sm:$0xff]   ;;  %v4238_v35 = vld [vmem:[%s5814_s6 + $0x30] sm:$0xff]  }
 0x2be   : > { %3768 = vmatpush3.bf16.msra.mxu0 %v4188_v52  ;;  %v4236_v52 = vld [vmem:[%s5727_s16] sm:$0xff]  }
 0x2bf   : > { %3769 = vmatprep.subr.bf16.mxu0 %v4190_v53  ;;  %v1277_v53 = vmax.f32 %v1272_v51, 0.0 }
 0x2c2   : > { %3770 = vmatpush3.bf16.msra.mxu0 %v4192_v54  ;;  %v2157_v54 = vpack.c.bf16 %v1277_v53, %v1277_v53 }
 0x2c3   : > { %3771 = vmatprep.subr.bf16.mxu0 %v4194_v55  ;;  %v4237_v55 = vld [vmem:[%s5814_s6 + $0x38] sm:$0xff]  }
 0x2c6   : > { %3772 = vmatpush3.bf16.msra.mxu0 %v4196_v56  ;;  %v4239_v56 = vld [vmem:[%s5814_s6 + $0x28] sm:$0xff]  }
 0x2c7   : > { %3773 = vmatprep.subr.bf16.mxu0 %v4198_v57  ;;  %v4240_v57 = vld [vmem:[%s5814_s6 + $0x20] sm:$0xff]  }
 0x2ca   : > { %3774 = vmatpush3.bf16.msra.mxu0 %v4200_v58  ;;  %v4241_v58 = vld [vmem:[%s5814_s6 + $0x18] sm:$0xff]  }
 0x2cb   : > { %3775 = vmatprep.subr.bf16.mxu0 %v4202_v59  ;;  %v4242_v59 = vld [vmem:[%s5814_s6 + $0x10] sm:$0xff]  }
 0x2ce   : > { %3776 = vmatpush3.bf16.msra.mxu0 %v4204_v60  ;;  %v4243_v60 = vld [vmem:[%s5814_s6 + $0x8] sm:$0xff]  }
 0x2cf   : > { %3777 = vmatprep.subr.bf16.mxu0 %v4207_v61  ;;  %v4244_v61 = vld [vmem:[%s5814_s6] sm:$0xff]  }
 0x2d2   : > { %3778 = vmatpush3.bf16.msra.mxu0 %v4208_v62  ;;  %v3759_v16 = vpop.f32.mrf.mxu1 }
 0x2d3   : > { %3779 = vmatprep.subr.bf16.mxu0 %v4209_v63 }
 0x2d4   : > { %v3760_v18 = vpop.f32.mrf.mxu1 }
 0x2d5   : > { %v3761_v19 = vadd.f32 %v3760_v18, %v3759_v16  ;;  %v3617_v16 = vld [vmem:[#allocation16] ss:$0 sm:$0xff] }
 0x2d6   : > { %3780 = vmatpush3.bf16.msra.mxu0 %v4210_v0  ;;  %v3762_v20 = vpop.f32.mrf.mxu1 }
 0x2d7   : > { %3903 = vmatprep.subr.bf16.mxu0 %v4729_v2  ;;  %v1998_v36 = vadd.f32 %v3761_v19, %v3547_v32 }
 0x2d8   : > { %v3763_v21 = vpop.f32.mrf.mxu1 }
 0x2d9   : > { %2036 = vmatmul.mubr.bf16.vlgmr.msra.gmra.mxu0 %v3550_v1 }
 0x2da   : > { %3904 = vmatpush3.bf16.msra.mxu0 %v4213_v3  ;;  %3919 = vmatprep.mubr.msk.bf16.mxu0 %vm4730_vm0, %v4729_v2  ;;  %v3584_v3 = vld [vmem:[#allocation15] ss:$0 sm:$0xff] }
 0x2db   : > { %3905 = vmatprep.subr.bf16.mxu0 %v4729_v2 }
 0x2de   : > { %3906 = vmatpush3.bf16.msra.mxu0 %v4214_v4 }
 0x2df   : > { %3907 = vmatprep.subr.bf16.mxu0 %v4729_v2 }
 0x2e2   : > { %3908 = vmatpush3.bf16.msra.mxu0 %v4215_v5 }
 0x2e3   : > { %3909 = vmatprep.subr.bf16.mxu0 %v4729_v2 }
 0x2e6   : > { %3910 = vmatpush3.bf16.msra.mxu0 %v4216_v6 }
 0x2e7   : > { %3911 = vmatprep.subr.bf16.mxu0 %v4729_v2 }
 0x2ea   : > { %3912 = vmatpush3.bf16.msra.mxu0 %v4217_v7 }
 0x2eb   : > { %3913 = vmatprep.subr.bf16.mxu0 %v4729_v2 }
 0x2ee   : > { %3914 = vmatpush3.bf16.msra.mxu0 %v4218_v8 }
 0x2ef   : > { %3915 = vmatprep.subr.bf16.mxu0 %v4729_v2 }
 0x2f2   : > { %3916 = vmatpush3.bf16.msra.mxu0 %v4219_v9 }
 0x2f3   : > { %3917 = vmatprep.subr.bf16.mxu0 %v4729_v2 }
 0x2f6   : > { %3918 = vmatpush3.bf16.msra.mxu0 %v4220_v10 }
 0x2f7   : > { %3943 = vmatprep.subr.bf16.mxu0 %v4729_v2 }
 0x379   : > { %v1677_v25 = vpop.f32.mrf.mxu0 }
 0x37a   : > { %v1678_v26 = vadd.f32 %v3538_v24, %v1677_v25 }
 0x37b   : > { %v3881_v27 = vpop.f32.mrf.mxu0 }
 0x37c   : > { %v1683_v28 = vmax.f32 %v1678_v26, 0.0 }
 0x37d   : > { %v1680_v29 = vpop.f32.mrf.mxu0 }
 0x37e   : > { %v2174_v30 = vpack.c.bf16 %v1683_v28, %v1683_v28 }
 0x37f   : > { %v3882_v31 = vpop.f32.mrf.mxu0 }
 0x380   : > { %3920 = vmatmul.mubr.bf16.vlgmr.msra.gmra.mxu0 %v2174_v30 }
 0x381   : > { %3959 = vmatprep.mubr.msk.bf16.mxu0 %vm4730_vm0, %v4729_v2  ;;  %3944 = vmatpush3.bf16.msra.mxu0 %v4237_v55 }
 0x382   : > { %3945 = vmatprep.subr.bf16.mxu0 %v4729_v2 }
 0x385   : > { %3946 = vmatpush3.bf16.msra.mxu0 %v4238_v35 }
 0x386   : > { %3947 = vmatprep.subr.bf16.mxu0 %v4729_v2 }
 0x389   : > { %3948 = vmatpush3.bf16.msra.mxu0 %v4239_v56 }
 0x38a   : > { %3949 = vmatprep.subr.bf16.mxu0 %v4729_v2 }
 0x38d   : > { %3950 = vmatpush3.bf16.msra.mxu0 %v4240_v57 }
 0x38e   : > { %3951 = vmatprep.subr.bf16.mxu0 %v4729_v2 }
 0x391   : > { %3952 = vmatpush3.bf16.msra.mxu0 %v4241_v58 }
 0x392   : > { %3953 = vmatprep.subr.bf16.mxu0 %v4729_v2 }
 0x395   : > { %3954 = vmatpush3.bf16.msra.mxu0 %v4242_v59 }
 0x396   : > { %3955 = vmatprep.subr.bf16.mxu0 %v4729_v2 }
 0x399   : > { %v3781_v33 = vpop.f32.mrf.mxu0  ;;  %3956 = vmatpush3.bf16.msra.mxu0 %v4243_v60 }
 0x39a   : > { %3957 = vmatprep.subr.bf16.mxu0 %v4729_v2 }
 0x39b   : > { %v3782_v34 = vpop.f32.mrf.mxu0 }
 0x39c   : > { %v3783_v37 = vadd.f32 %v3782_v34, %v3781_v33 }
 0x39d   : > { %v3784_v38 = vpop.f32.mrf.mxu0  ;;  %3958 = vmatpush3.bf16.msra.mxu0 %v4244_v61 }
 0x39e   : > { %v2038_v39 = vadd.f32 %v3783_v37, %v1998_v36 }
 0x39f   : > { %v3785_v40 = vpop.f32.mrf.mxu0 }
 0x3a0   : > { %v2043_v41 = vmax.f32 %v2038_v39, 0.0 }
 0x3a2   : > { %v2044_v43 = vpack.c.bf16 %v2043_v41, %v2043_v41 }
 0x3a4   : > { %3900 = vmatmul.mubr.bf16.vlgmr.msra.gmra.mxu1 %v2044_v43 }
 0x3a5   : > { %3924 = vmatpush3.bf16.msra.mxu1 %v4229_v42  ;;  %3939 = vmatprep.mubr.msk.bf16.mxu1 %vm4730_vm0, %v4729_v2 }
 0x3a6   : > { %3925 = vmatprep.subr.bf16.mxu1 %v4729_v2 }
 0x3a9   : > { %3926 = vmatpush3.bf16.msra.mxu1 %v4230_v44 }
 0x3aa   : > { %3927 = vmatprep.subr.bf16.mxu1 %v4729_v2 }
 0x3ad   : > { %3928 = vmatpush3.bf16.msra.mxu1 %v4231_v45 }
 0x3ae   : > { %3929 = vmatprep.subr.bf16.mxu1 %v4729_v2 }
 0x3b1   : > { %3930 = vmatpush3.bf16.msra.mxu1 %v4232_v46 }
 0x3b2   : > { %3931 = vmatprep.subr.bf16.mxu1 %v4729_v2 }
 0x3b5   : > { %3932 = vmatpush3.bf16.msra.mxu1 %v4233_v47 }
 0x3b6   : > { %3933 = vmatprep.subr.bf16.mxu1 %v4729_v2 }
 0x3b9   : > { %3934 = vmatpush3.bf16.msra.mxu1 %v4234_v48 }
 0x3ba   : > { %3935 = vmatprep.subr.bf16.mxu1 %v4729_v2 }
 0x3bd   : > { %3936 = vmatpush3.bf16.msra.mxu1 %v4235_v50 }
 0x3be   : > { %3937 = vmatprep.subr.bf16.mxu1 %v4729_v2 }
 0x3c1   : > { %3938 = vmatpush3.bf16.msra.mxu1 %v4236_v52 }
 0x3c4   : > { %3940 = vmatmul.mubr.bf16.vlgmr.msra.gmra.mxu1 %v2157_v54 }
 0x440   : > { %v2273_v62 = vpop.f32.mrf.mxu0 }
 0x442   : > { %v3921_v63 = vpop.f32.mrf.mxu0 }
 0x444   : > { %v2276_v0 = vpop.f32.mrf.mxu0 }
 0x446   : > { %v3922_v1 = vpop.f32.mrf.mxu0 }
 0x464   : > { %v2150_v4 = vpop.f32.mrf.mxu1 }
 0x465   : > { %v2151_v5 = vadd.f32 %v3584_v3, %v2150_v4 }
 0x466   : > { %v3901_v6 = vpop.f32.mrf.mxu1 }
 0x467   : > { %v2156_v7 = vmax.f32 %v2151_v5, 0.0 }
 0x468   : > { %v2153_v8 = vpop.f32.mrf.mxu1 }
 0x469   : > { %v2367_v9 = vpack.c.bf16 %v2156_v7, %v2156_v7 }
 0x46a   : > { %v3902_v10 = vpop.f32.mrf.mxu1 }
 0x46b   : > { %3960 = vmatmul.mubr.bf16.vlgmr.msra.gmra.mxu0 %v2367_v9 }
 0x484   : > { %v2361_v11 = vpop.f32.mrf.mxu1 }
 0x485   : > { %v2362_v14 = vadd.f32 %v2361_v11, %v2273_v62 }
 0x486   : > { %v3941_v2 = vpop.f32.mrf.mxu1 }
 0x488   : > { %v2364_v12 = vpop.f32.mrf.mxu1 }
 0x48a   : > { %v3942_v13 = vpop.f32.mrf.mxu1 }
 0x52b   : > { %v2466_v15 = vpop.f32.mrf.mxu0 }
 0x52c   : > { %v2472_v17 = vadd.f32 %v2466_v15, %v2362_v14 }
 0x52d   : > { %v3961_v18 = vpop.f32.mrf.mxu0 }
 0x52e   : > { %v2480_v19 = vadd.f32 %v3617_v16, %v2472_v17 }
 0x52f   : > { %v2469_v20 = vpop.f32.mrf.mxu0 }
 0x530   : > { %v2512_v21 = vsel %vm2495_vm1, %v2480_v19, -inf  ;;  %v2482_v22 = vmul.f32 %v2480_v19, %v2480_v19  ;;  %v2488_v24 = vmul.f32 1.442695, %v2480_v19  ;;  %v2481_v25 = vadd.f32 1.0, %v2480_v19 }
 0x531   : > { %v3962_v23 = vpop.f32.mrf.mxu0  ;;  %2513 = vmax.xlane.f32.xlu1 %v2512_v21 }
 0x532   : > { %2484 = vrot.lane.b32.xlu0 %v2482_v22, %s4731_s2  ;;  %4245 = vpow2.f32 %v2488_v24 }
 0x53f   : > { %v4246_v28 = vpop.eup %4245 }
 0x5a4   : > { %v2485_v26 = vpop.permute.xlu0 %2484 }
 0x5a5   : > { %v2487_v27 = vsub.f32 %v2481_v25, %v2485_v26 }
 0x5a7   : > { %v2490_v29 = vsub.f32 %v2487_v27, %v4246_v28 }
 0x5a9   : > { %2492 = vrot.lane.b32.xlu0 %v2490_v29, %s4732_s1 }
 0x5ba   : > { %v2514_v30 = vpop.xlane.xlu1 %2513 }
 0x5bb   : > { %v2515_v31 = vsub.f32 %v2480_v19, %v2514_v30 }
 0x5bd   : > { %v2516_v32 = vmul.f32 1.442695, %v2515_v31 }
 0x5bf   : > { %4247 = vpow2.f32 %v2516_v32 }
 0x5cc   : > { %v4248_v33 = vpop.eup %4247 }
 0x5cd   : > { %v2518_v34 = vsel %vm2495_vm1, %v4248_v33, 0.0 }
 0x5ce   : > { %2519 = vadd.xlane.f32.xlu0 %v2518_v34 }
 0x61b   : > { %v2493_v36 = vpop.permute.xlu0 %2492 }
 0x61c   : > { %v2496_v37 = vsel %vm2495_vm1, %v2493_v36, 0.0 }
 0x61d   : > { %2497 = vadd.xlane.f32.xlu1 %v2496_v37 }
 0x657   : > { %v2520_v38 = vpop.xlane.xlu0 %2519 }
 0x658   : > { %4249 = vrcp.f32 %v2520_v38 }
 0x665   : > { %v4250_v39 = vpop.eup %4249 }
 0x666   : > { %v2522_v40 = vmul.f32 %v4250_v39, %v4248_v33 }
 0x668   : > { %2523 = vst.msk [vmem:[#allocation2] sm:$0xff] %vm2495_vm1, %v2522_v40  ;;  %2524 = vst.msk [vmem:[#allocation20] sm:$0xff] %vm2495_vm1, %v2522_v40 }
 0x6a6   : > { %v2498_v41 = vpop.xlane.xlu1 %2497 }
 0x6a7   : > { %v2499_v42 = vrot.slane %v2498_v41, 4 }
 0x6a9   : > { %v2500_v43 = vadd.f32 %v2499_v42, %v2498_v41 }
 0x6ab   : > { %v2501_v44 = vrot.slane %v2500_v43, 2 }
 0x6ad   : > { %v2502_v45 = vadd.f32 %v2501_v44, %v2500_v43 }
 0x6af   : > { %v2503_v46 = vrot.slane %v2502_v45, 1 }
 0x6b1   : > { %v2504_v47 = vadd.f32 %v2503_v46, %v2502_v45 }
 0x6b3   : > { %3963 = vpush %v2504_v47 }
 0x6e4   : > { %s3964_s5 = spop %3963 }
 0x6e5   : > { %s2506_s10 = smul.f32 -0.5, %s3964_s5 }
 0x6e7   : > { %s2509_s26 = smul.f32 0.125, %s2506_s10 }
 0x6e9   : > { %2511 = sst [smem:[#allocation21 + $0x3]] %s2509_s26 }
 0x6ea PF: > { %v4251_v48 = vld [vmem:[%s5101_s8 + $0xe4] ss:$16 sps:$4 sm:$0xff]   ;;  %v4253_v49 = vld [vmem:[%s5101_s8 + $0xec] ss:$16 sps:$4 sm:$0xff]   ;;  %v4733_v50 = vmov 0   ;;  %s5815_s30 = sld [smem:[#allocation46_spill]]  ;;  %v2563_v18 = vlaneseq }
 0x6eb   : > { %2787 = vmatprep.mubr.bf16.mxu0 %v4733_v50  ;;  %2840 = vmatprep.mubr.bf16.mxu1 %v4733_v50  ;;  %v4255_v51 = vld [vmem:[%s5101_s8 + $0xe0] ss:$16 sps:$4 sm:$0xff]   ;;  %v4256_v52 = vld [vmem:[%s5101_s8 + $0xe8] ss:$16 sps:$4 sm:$0xff]   ;;  %v4257_v53 = vld [vmem:[%s5101_s8 + $0xc4] ss:$16 sps:$4 sm:$0xff]  }
 0x6ec   : > { %2755 = vmatprep.subr.bf16.mxu0 %v4251_v48  ;;  %2808 = vmatprep.subr.bf16.mxu1 %v4253_v49  ;;  %v4259_v54 = vld [vmem:[%s5101_s8 + $0xcc] ss:$16 sps:$4 sm:$0xff]   ;;  %v4261_v55 = vld [vmem:[%s5101_s8 + $0xc0] ss:$16 sps:$4 sm:$0xff]   ;;  %v4262_v35 = vld [vmem:[%s5101_s8 + $0xc8] ss:$16 sps:$4 sm:$0xff]  }
 0x6ed   : > { %2756 = vmatpush1.bf16.msra.mxu0 %v4255_v51  ;;  %2809 = vmatpush1.bf16.msra.mxu1 %v4256_v52  ;;  %v4263_v56 = vld [vmem:[%s5101_s8 + $0xa4] ss:$16 sps:$4 sm:$0xff]   ;;  %v4265_v57 = vld [vmem:[%s5101_s8 + $0xac] ss:$16 sps:$4 sm:$0xff]   ;;  %v4267_v58 = vld [vmem:[%s5101_s8 + $0xa0] ss:$16 sps:$4 sm:$0xff]  }
 0x6ee   : > { %2757 = vmatprep.subr.bf16.mxu0 %v4257_v53  ;;  %2810 = vmatprep.subr.bf16.mxu1 %v4259_v54  ;;  %v4268_v59 = vld [vmem:[%s5101_s8 + $0xa8] ss:$16 sps:$4 sm:$0xff]   ;;  %v4269_v60 = vld [vmem:[%s5101_s8 + $0x84] ss:$16 sps:$4 sm:$0xff]   ;;  %v4271_v61 = vld [vmem:[%s5101_s8 + $0x8c] ss:$16 sps:$4 sm:$0xff]  }
 0x6ef   : > { %v4273_v62 = vld [vmem:[%s5101_s8 + $0x80] ss:$16 sps:$4 sm:$0xff]   ;;  %v4274_v63 = vld [vmem:[%s5101_s8 + $0x88] ss:$16 sps:$4 sm:$0xff]   ;;  %v4275_v0 = vld [vmem:[%s5101_s8 + $0x64] ss:$16 sps:$4 sm:$0xff]  }
 0x6f0   : > { %v4277_v1 = vld [vmem:[%s5101_s8 + $0x6c] ss:$16 sps:$4 sm:$0xff]   ;;  %v4279_v3 = vld [vmem:[%s5101_s8 + $0x60] ss:$16 sps:$4 sm:$0xff]   ;;  %v4280_v4 = vld [vmem:[%s5101_s8 + $0x68] ss:$16 sps:$4 sm:$0xff]  }
 0x6f1   : > { %2758 = vmatpush1.bf16.msra.mxu0 %v4261_v55  ;;  %2811 = vmatpush1.bf16.msra.mxu1 %v4262_v35  ;;  %v4281_v5 = vld [vmem:[%s5101_s8 + $0x44] ss:$16 sps:$4 sm:$0xff]   ;;  %v4283_v6 = vld [vmem:[%s5101_s8 + $0x4c] ss:$16 sps:$4 sm:$0xff]   ;;  %v4285_v7 = vld [vmem:[%s5101_s8 + $0x40] ss:$16 sps:$4 sm:$0xff]  }
 0x6f2   : > { %2759 = vmatprep.subr.bf16.mxu0 %v4263_v56  ;;  %2812 = vmatprep.subr.bf16.mxu1 %v4265_v57  ;;  %v4286_v8 = vld [vmem:[%s5101_s8 + $0x48] ss:$16 sps:$4 sm:$0xff]   ;;  %v4287_v9 = vld [vmem:[%s5101_s8 + $0x24] ss:$16 sps:$4 sm:$0xff]   ;;  %v4289_v10 = vld [vmem:[%s5101_s8 + $0x2c] ss:$16 sps:$4 sm:$0xff]  }
 0x6f3   : > { %v4291_v11 = vld [vmem:[%s5101_s8 + $0x20] ss:$16 sps:$4 sm:$0xff]   ;;  %v4292_v2 = vld [vmem:[%s5101_s8 + $0x28] ss:$16 sps:$4 sm:$0xff]   ;;  %v4293_v12 = vld [vmem:[%s5101_s8 + $0x4] ss:$16 sps:$4 sm:$0xff]  }
 0x6f4   : > { %v4295_v13 = vld [vmem:[%s5101_s8 + $0xc] ss:$16 sps:$4 sm:$0xff]   ;;  %v4297_v14 = vld [vmem:[%s5101_s8] ss:$16 sps:$4 sm:$0xff]   ;;  %v4298_v15 = vld [vmem:[%s5101_s8 + $0x8] ss:$16 sps:$4 sm:$0xff]  }
 0x6f5   : > { %2760 = vmatpush1.bf16.msra.mxu0 %v4267_v58  ;;  %2813 = vmatpush1.bf16.msra.mxu1 %v4268_v59  ;;  %v4299_v16 = vld [vmem:[%s5815_s30] sm:$0xff]   ;;  %v4300_v17 = vld [vmem:[%s5815_s30 + $0x8] sm:$0x1f]   ;;  %v2564_v19 = vshrl.u32 %v2563_v18, 7  ;;  %s5816_s8 = scalar_lea.vmem [#allocation19], %s5107_s20  ;;  %vm2876_vm2 = vcmask 1040384  }
 0x6f6   : > { %2761 = vmatprep.subr.bf16.mxu0 %v4269_v60  ;;  %2814 = vmatprep.subr.bf16.mxu1 %v4271_v61  ;;  %v2561_v22 = vld [vmem:[%s5816_s8] sm:$0xf]  ;;  %vm2995_vm3 = vcmask 203776   ;;  %p4060_p5 = scmp.eq.s32.totalorder %s4893_s29, 2  ;;  %s4735_s20 = smov [#allocation20]  }
 0x6f7   : > { %v2569_v20 = vsub.s32 1, %v2564_v19  ;;  %v2565_v21 = vsub.s32 0, %v2564_v19  ;;  %v2573_v25 = vsub.s32 2, %v2564_v19  ;;  %v2577_v30 = vsub.s32 3, %v2564_v19 }
 0x6f9   : > { %2762 = vmatpush1.bf16.msra.mxu0 %v4273_v62  ;;  %2815 = vmatpush1.bf16.msra.mxu1 %v4274_v63  ;;  %v2570_v26 = vrot.slane %v2561_v22, %v2569_v20  ;;  %v2566_v29 = vrot.slane %v2561_v22, %v2565_v21  ;;  %v2574_v33 = vrot.slane %v2561_v22, %v2573_v25 }
 0x6fa   : > { %2763 = vmatprep.subr.bf16.mxu0 %v4275_v0  ;;  %2816 = vmatprep.subr.bf16.mxu1 %v4277_v1  ;;  %v2578_v41 = vrot.slane %v2561_v22, %v2577_v30 }
 0x6fd   : > { %2764 = vmatpush1.bf16.msra.mxu0 %v4279_v3  ;;  %2817 = vmatpush1.bf16.msra.mxu1 %v4280_v4 }
 0x6fe   : > { %2765 = vmatprep.subr.bf16.mxu0 %v4281_v5  ;;  %2818 = vmatprep.subr.bf16.mxu1 %v4283_v6 }
 0x701   : > { %2766 = vmatpush1.bf16.msra.mxu0 %v4285_v7  ;;  %2819 = vmatpush1.bf16.msra.mxu1 %v4286_v8 }
 0x702   : > { %2767 = vmatprep.subr.bf16.mxu0 %v4287_v9  ;;  %2820 = vmatprep.subr.bf16.mxu1 %v4289_v10 }
 0x705   : > { %2768 = vmatpush1.bf16.msra.mxu0 %v4291_v11  ;;  %2821 = vmatpush1.bf16.msra.mxu1 %v4292_v2 }
 0x706   : > { %2769 = vmatprep.subr.bf16.mxu0 %v4293_v12  ;;  %2822 = vmatprep.subr.bf16.mxu1 %v4295_v13 }
 0x709   : > { %2770 = vmatpush1.bf16.msra.mxu0 %v4297_v14  ;;  %2823 = vmatpush1.bf16.msra.mxu1 %v4298_v15 }
 0x70c   : > { %2788 = vmatmul.mubr.bf16.vlgmr.msra.gmra.mxu0 %v4299_v16  ;;  %2841 = vmatmul.mubr.bf16.vlgmr.msra.gmra.mxu1 %v4299_v16 }
 0x70d   : > { %2797 = vmatprep.mubr.bf16.mxu0 %v4733_v50  ;;  %2850 = vmatprep.mubr.bf16.mxu1 %v4733_v50 }
 0x714   : > { %2798 = vmatmul.mubr.bf16.gmra.mxu0 %v4300_v17  ;;  %2851 = vmatmul.mubr.bf16.gmra.mxu1 %v4300_v17 }
 0x7cc   : > { %v2789_v23 = vpop.f32.mrf.mxu0  ;;  %v2842_v24 = vpop.f32.mrf.mxu1 }
 0x7cd   : > { %v2790_v38 = vadd.f32 %v2789_v23, %v2566_v29  ;;  %v5602_v44 = vadd.f32 %v2842_v24, %v2574_v33 }
 0x7ce   : > { %v2791_v27 = vpop.f32.mrf.mxu0  ;;  %v2844_v28 = vpop.f32.mrf.mxu1 }
 0x7cf   : > { %v2792_v34 = vadd.f32 %v2791_v27, %v2570_v26  ;;  %v5611_v59 = vadd.f32 %v2844_v28, %v2578_v41 }
 0x7d0   : > { %v2793_v31 = vpop.f32.mrf.mxu0  ;;  %v2846_v32 = vpop.f32.mrf.mxu1 }
 0x7d1   : > { %v2794_v39 = vadd.f32 %v2793_v31, %v2566_v29  ;;  %v2861_v45 = vmax.f32 %v2790_v38, %v2792_v34  ;;  %v5604_v46 = vadd.f32 %v2846_v32, %v2574_v33 }
 0x7d2   : > { %v2795_v36 = vpop.f32.mrf.mxu0  ;;  %v2848_v37 = vpop.f32.mrf.mxu1 }
 0x7d3   : > { %v2796_v40 = vadd.f32 %v2795_v36, %v2570_v26  ;;  %v5606_v50 = vadd.f32 %v2848_v37, %v2578_v41  ;;  %v2862_v35 = vmax.f32 %v2861_v45, %v5602_v44 }
 0x7d4   : > { %v2799_v42 = vpop.f32.mrf.mxu0  ;;  %v2852_v43 = vpop.f32.mrf.mxu1 }
 0x7d5   : > { %v2866_v47 = vmax.f32 %v2794_v39, %v2796_v40  ;;  %v2800_v62 = vadd.f32 %v2799_v42, %v2566_v29  ;;  %v2863_v3 = vmax.f32 %v2862_v35, %v5611_v59  ;;  %v2853_v4 = vadd.f32 %v2852_v43, %v2574_v33 }
 0x7d6   : > { %v2801_v48 = vpop.f32.mrf.mxu0  ;;  %v2854_v49 = vpop.f32.mrf.mxu1 }
 0x7d7   : > { %v2867_v51 = vmax.f32 %v2866_v47, %v5604_v46  ;;  %v2802_v56 = vadd.f32 %v2801_v48, %v2570_v26  ;;  %v2855_v2 = vadd.f32 %v2854_v49, %v2578_v41 }
 0x7d8   : > { %v2803_v52 = vpop.f32.mrf.mxu0  ;;  %v2856_v53 = vpop.f32.mrf.mxu1 }
 0x7d9   : > { %v2804_v54 = vadd.f32 %v2803_v52, %v2566_v29  ;;  %v2868_v55 = vmax.f32 %v2867_v51, %v5606_v50  ;;  %v2857_v60 = vadd.f32 %v2856_v53, %v2574_v33  ;;  %v2871_v5 = vmax.f32 %v2800_v62, %v2802_v56 }
 0x7da   : > { %v2805_v57 = vpop.f32.mrf.mxu0  ;;  %v2858_v58 = vpop.f32.mrf.mxu1 }
 0x7db   : > { %v2806_v61 = vadd.f32 %v2805_v57, %v2570_v26  ;;  %2869 = vmax.xlane.f32.xlu1 %v2868_v55  ;;  %v2877_v63 = vsel %vm2876_vm2, %v2804_v54, -inf  ;;  %v2859_v1 = vadd.f32 %v2858_v58, %v2578_v41  ;;  %v2880_v7 = vsel %vm2876_vm2, %v2857_v60, -inf }
 0x7dc   : > { %v2872_v11 = vmax.f32 %v2871_v5, %v2853_v4 }
 0x7dd   : > { %v2878_v0 = vsel %vm2876_vm2, %v2806_v61, -inf  ;;  %v2882_v9 = vsel %vm2876_vm2, %v2859_v1, -inf }
 0x7de   : > { %v2879_v6 = vmax.f32 %v2877_v63, %v2878_v0  ;;  %v2873_v12 = vmax.f32 %v2872_v11, %v2855_v2 }
 0x7df   : > { %2864 = vmax.xlane.f32.xlu1 %v2863_v3 }
 0x7e0   : > { %v2881_v8 = vmax.f32 %v2879_v6, %v2880_v7 }
 0x7e2   : > { %v2883_v10 = vmax.f32 %v2881_v8, %v2882_v9 }
 0x7e4   : > { %2884 = vmax.xlane.f32.xlu0 %v2883_v10 }
 0x7e8   : > { %2874 = vmax.xlane.f32.xlu0 %v2873_v12 }
 0x864   : > { %v2870_v13 = vpop.xlane.xlu1 %2869 }
 0x865   : > { %v2890_v14 = vsub.f32 %v2794_v39, %v2870_v13  ;;  %v2891_v15 = vsub.f32 %v2796_v40, %v2870_v13  ;;  %v2892_v27 = vsub.f32 %v5604_v46, %v2870_v13  ;;  %v2893_v39 = vsub.f32 %v5606_v50, %v2870_v13 }
 0x867   : > { %v2910_v19 = vmul.f32 1.442695, %v2890_v14  ;;  %v2912_v20 = vmul.f32 1.442695, %v2891_v15  ;;  %v2914_v41 = vmul.f32 1.442695, %v2892_v27 }
 0x868   : > { %v2865_v16 = vpop.xlane.xlu1 %2864  ;;  %v2916_v48 = vmul.f32 1.442695, %v2893_v39 }
 0x869   : > { %v2886_v17 = vsub.f32 %v2790_v38, %v2865_v16  ;;  %v2887_v18 = vsub.f32 %v2792_v34, %v2865_v16  ;;  %4301 = vpow2.f32 %v2910_v19  ;;  %v2888_v32 = vsub.f32 %v5602_v44, %v2865_v16 }
 0x86a   : > { %4303 = vpow2.f32 %v2912_v20  ;;  %v2889_v44 = vsub.f32 %v5611_v59, %v2865_v16 }
 0x86b   : > { %v2902_v21 = vmul.f32 1.442695, %v2886_v17  ;;  %v2904_v22 = vmul.f32 1.442695, %v2887_v18  ;;  %v2906_v46 = vmul.f32 1.442695, %v2888_v32 }
 0x86c   : > { %v2908_v50 = vmul.f32 1.442695, %v2889_v44  ;;  %v4734_v17 = vmov 0.0  }
 0x86d   : > { %v2885_v23 = vpop.xlane.xlu0 %2884  ;;  %4305 = vpow2.f32 %v2902_v21  ;;  %3075 = vmatprep.mubr.f32.mxu0 %v4734_v17  ;;  %3146 = vmatprep.mubr.f32.mxu1 %v4734_v17 }
 0x86e   : > { %v2898_v24 = vsub.f32 %v2804_v54, %v2885_v23  ;;  %v2899_v25 = vsub.f32 %v2806_v61, %v2885_v23  ;;  %v2900_v26 = vsub.f32 %v2857_v60, %v2885_v23  ;;  %v2901_v28 = vsub.f32 %v2859_v1, %v2885_v23 }
 0x86f   : > { %4307 = vpow2.f32 %v2904_v22 }
 0x870   : > { %v2926_v29 = vmul.f32 1.442695, %v2898_v24  ;;  %v2928_v30 = vmul.f32 1.442695, %v2899_v25  ;;  %v2930_v31 = vmul.f32 1.442695, %v2900_v26 }
 0x871   : > { %v2932_v33 = vmul.f32 1.442695, %v2901_v28  ;;  %v2875_v34 = vpop.xlane.xlu0 %2874 }
 0x872   : > { %4309 = vpow2.f32 %v2926_v29  ;;  %v2894_v36 = vsub.f32 %v2800_v62, %v2875_v34  ;;  %v2895_v37 = vsub.f32 %v2802_v56, %v2875_v34  ;;  %v2896_v38 = vsub.f32 %v2853_v4, %v2875_v34 }
 0x873   : > { %4311 = vpow2.f32 %v2928_v30  ;;  %v2897_v40 = vsub.f32 %v2855_v2, %v2875_v34 }
 0x874   : > { %4313 = vpow2.f32 %v2930_v31  ;;  %v2918_v42 = vmul.f32 1.442695, %v2894_v36  ;;  %v2920_v43 = vmul.f32 1.442695, %v2895_v37  ;;  %v2922_v45 = vmul.f32 1.442695, %v2896_v38 }
 0x875   : > { %4315 = vpow2.f32 %v2932_v33  ;;  %v2924_v47 = vmul.f32 1.442695, %v2897_v40 }
 0x876   : > { %4317 = vpow2.f32 %v2918_v42  ;;  %v5622_v49 = vpop.eup %4301 }
 0x877   : > { %4319 = vpow2.f32 %v2920_v43  ;;  %v5624_v51 = vpop.eup %4303  ;;  %v2994_v43 = vld [vmem:[#allocation2] sm:$0xff] }
 0x878   : > { %4321 = vpow2.f32 %v2914_v41  ;;  %v2939_v60 = vadd.f32 %v5624_v51, %v5622_v49 }
 0x879   : > { %4323 = vpow2.f32 %v2922_v45 }
 0x87a   : > { %4325 = vpow2.f32 %v2906_v46  ;;  %v5626_v52 = vpop.eup %4305 }
 0x87b   : > { %4327 = vpow2.f32 %v2924_v47 }
 0x87c   : > { %4329 = vpow2.f32 %v2916_v48  ;;  %v5628_v53 = vpop.eup %4307 }
 0x87d   : > { %4331 = vpow2.f32 %v2908_v50  ;;  %v2934_v5 = vadd.f32 %v5628_v53, %v5626_v52 }
 0x87f   : > { %v4310_v54 = vpop.eup %4309 }
 0x880   : > { %v4312_v55 = vpop.eup %4311  ;;  %v2949_v35 = vsel %vm2876_vm2, %v4310_v54, 0.0 }
 0x881   : > { %v4314_v56 = vpop.eup %4313  ;;  %v2950_v57 = vsel %vm2876_vm2, %v4312_v55, 0.0 }
 0x882   : > { %v4316_v58 = vpop.eup %4315  ;;  %v2951_v59 = vadd.f32 %v2950_v57, %v2949_v35  ;;  %v2952_v62 = vsel %vm2876_vm2, %v4314_v56, 0.0  ;;  %v3165_v35 = vld [vmem:[%s5114_s23] sm:$0xff] }
 0x883   : > { %v4318_v61 = vpop.eup %4317  ;;  %v2954_v3 = vsel %vm2876_vm2, %v4316_v58, 0.0 }
 0x884   : > { %v4320_v63 = vpop.eup %4319  ;;  %v2953_v0 = vadd.f32 %v2952_v62, %v2951_v59 }
 0x885   : > { %v4322_v1 = vpop.eup %4321  ;;  %v2944_v4 = vadd.f32 %v4320_v63, %v4318_v61 }
 0x886   : > { %v4324_v6 = vpop.eup %4323  ;;  %v2955_v7 = vadd.f32 %v2954_v3, %v2953_v0  ;;  %v2940_v8 = vadd.f32 %v4322_v1, %v2939_v60 }
 0x887   : > { %v5638_v9 = vpop.eup %4325  ;;  %v2945_v10 = vadd.f32 %v4324_v6, %v2944_v4 }
 0x888   : > { %v4328_v11 = vpop.eup %4327  ;;  %2956 = vadd.xlane.f32.xlu0 %v2955_v7  ;;  %v2935_v13 = vadd.f32 %v5638_v9, %v2934_v5 }
 0x889   : > { %v4330_v2 = vpop.eup %4329  ;;  %v2946_v12 = vadd.f32 %v4328_v11, %v2945_v10 }
 0x88a   : > { %v2941_v14 = vadd.f32 %v4330_v2, %v2940_v8  ;;  %v4332_v15 = vpop.eup %4331 }
 0x88b   : > { %2947 = vadd.xlane.f32.xlu1 %v2946_v12  ;;  %v2936_v16 = vadd.f32 %v4332_v15, %v2935_v13 }
 0x88c   : > { %2942 = vadd.xlane.f32.xlu0 %v2941_v14 }
 0x88f   : > { %2937 = vadd.xlane.f32.xlu1 %v2936_v16 }
 0x911   : > { %v2957_v18 = vpop.xlane.xlu0 %2956 }
 0x912   : > { %4333 = vrcp.f32 %v2957_v18 }
 0x914   : > { %v2948_v19 = vpop.xlane.xlu1 %2947 }
 0x915   : > { %4335 = vrcp.f32 %v2948_v19  ;;  %v2943_v20 = vpop.xlane.xlu0 %2942 }
 0x916   : > { %4337 = vrcp.f32 %v2943_v20 }
 0x918   : > { %v2938_v21 = vpop.xlane.xlu1 %2937 }
 0x919   : > { %4339 = vrcp.f32 %v2938_v21 }
 0x91f   : > { %v4334_v22 = vpop.eup %4333 }
 0x920   : > { %v2975_v23 = vmul.f32 %v4334_v22, %v4312_v55  ;;  %v2977_v24 = vmul.f32 %v4334_v22, %v4316_v58  ;;  %v2974_v25 = vmul.f32 %v4334_v22, %v4310_v54  ;;  %v2976_v26 = vmul.f32 %v4334_v22, %v4314_v56  ;;  %v3166_v56 = vld [vmem:[%s5114_s23 + $0x8] sm:$0xff]  ;;  %v3167_v58 = vld [vmem:[%s5114_s23 + $0x10] sm:$0xff] }
 0x922   : > { %v4336_v27 = vpop.eup %4335  ;;  %2991 = vst [vmem:[%s5119_s27 + $0x68] sm:$0x1] %v2975_v23  ;;  %3652 = vmatprep.subr.msk.mxu0 %vm2876_vm2, %v2975_v23  ;;  %2993 = vst [vmem:[%s5119_s27 + $0x78] sm:$0x1] %v2977_v24  ;;  %3655 = vmatprep.subr.msk.mxu1 %vm2876_vm2, %v2977_v24 }
 0x923   : > { %2990 = vst [vmem:[%s5119_s27 + $0x60] sm:$0x1] %v2974_v25  ;;  %2992 = vst [vmem:[%s5119_s27 + $0x70] sm:$0x1] %v2976_v26  ;;  %v4338_v28 = vpop.eup %4337  ;;  %3653 = vmatpush1.msk.msra.mxu0 %vm2876_vm2, %v2974_v25  ;;  %3656 = vmatpush1.msk.msra.mxu1 %vm2876_vm2, %v2976_v26  ;;  %v2970_v29 = vmul.f32 %v4336_v27, %v4320_v63  ;;  %v2972_v30 = vmul.f32 %v4336_v27, %v4328_v11 }
 0x924   : > { %v2969_v31 = vmul.f32 %v4336_v27, %v4318_v61  ;;  %v2971_v32 = vmul.f32 %v4336_v27, %v4324_v6  ;;  %v2965_v33 = vmul.f32 %v4338_v28, %v5624_v51  ;;  %v2967_v34 = vmul.f32 %v4338_v28, %v4330_v2 }
 0x925   : > { %v2964_v36 = vmul.f32 %v4338_v28, %v5622_v49  ;;  %2987 = vst [vmem:[%s5119_s27 + $0x48] sm:$0xff] %v2970_v29  ;;  %3037 = vmatprep.subr.mxu0 %v2970_v29  ;;  %2989 = vst [vmem:[%s5119_s27 + $0x58] sm:$0xff] %v2972_v30  ;;  %3108 = vmatprep.subr.mxu1 %v2972_v30  ;;  %v2966_v37 = vmul.f32 %v4338_v28, %v4322_v1  ;;  %v3168_v1 = vld [vmem:[%s5114_s23 + $0x18] sm:$0xff] }
 0x926   : > { %2986 = vst [vmem:[%s5119_s27 + $0x40] sm:$0xff] %v2969_v31  ;;  %v4340_v38 = vpop.eup %4339  ;;  %3038 = vmatpush1.msra.mxu0 %v2969_v31  ;;  %2988 = vst [vmem:[%s5119_s27 + $0x50] sm:$0xff] %v2971_v32  ;;  %3109 = vmatpush1.msra.mxu1 %v2971_v32 }
 0x927   : > { %2983 = vst [vmem:[%s5119_s27 + $0x28] sm:$0xff] %v2965_v33  ;;  %2985 = vst [vmem:[%s5119_s27 + $0x38] sm:$0xff] %v2967_v34  ;;  %3039 = vmatprep.subr.mxu0 %v2965_v33  ;;  %3110 = vmatprep.subr.mxu1 %v2967_v34  ;;  %v2960_v39 = vmul.f32 %v4340_v38, %v5628_v53  ;;  %v2962_v40 = vmul.f32 %v4340_v38, %v4332_v15 }
 0x928   : > { %2982 = vst [vmem:[%s5119_s27 + $0x20] sm:$0xff] %v2964_v36  ;;  %2984 = vst [vmem:[%s5119_s27 + $0x30] sm:$0xff] %v2966_v37  ;;  %v2959_v41 = vmul.f32 %v4340_v38, %v5626_v52  ;;  %3040 = vmatpush1.msra.mxu0 %v2964_v36  ;;  %3111 = vmatpush1.msra.mxu1 %v2966_v37  ;;  %v2961_v42 = vmul.f32 %v4340_v38, %v5638_v9 }
 0x929   : > { %2979 = vst [vmem:[%s5119_s27 + $0x8] sm:$0xff] %v2960_v39  ;;  %3041 = vmatprep.subr.mxu0 %v2960_v39  ;;  %2981 = vst [vmem:[%s5119_s27 + $0x18] sm:$0xff] %v2962_v40  ;;  %3112 = vmatprep.subr.mxu1 %v2962_v40 }
 0x92a   : > { %2978 = vst [vmem:[%s5119_s27] sm:$0xff] %v2959_v41  ;;  %3042 = vmatpush1.msra.mxu0 %v2959_v41  ;;  %2980 = vst [vmem:[%s5119_s27 + $0x10] sm:$0xff] %v2961_v42  ;;  %3113 = vmatpush1.msra.mxu1 %v2961_v42  ;;  %s3206_s27 = sshll.u32 %s4735_s20, 4  ;;  %s3207_s27 = int_to_ptr.vmem [resolvable:$true] %s3206_s27 }
 0x92b   : > { %3654 = vmatmul.mubr.msk.f32.vlgmr.msra.gmra.mxu0 %vm2995_vm3, %v2994_v43  ;;  %3657 = vmatmul.mubr.msk.f32.vlgmr.msra.gmra.mxu1 %vm2995_vm3, %v2994_v43  ;;  %s4613_s1 = scalar_lea.vmem %s3207_s27, 128  ;;  %p4620_p1 = scmp.lt.s32.totalorder %s3207_s27, %s3207_s27 }
 0x92c   : > { %p4614_p12 = scmp.ne.s32.totalorder %s3207_s27, %s4613_s1  ;;  %p4621_p4 = scmp.lt.s32.totalorder %s4613_s1, %s4613_s1 }
 0x92e   : > { %p4615_p3 = pnand %p4614_p12, %p4060_p5  ;;  %p4622_p0 = por %p4621_p4, %p4620_p1 }
 0x930   : > { %p4616_p9 = pneg %p4615_p3 }
 0x932   : > { %p4623_p13 = pnand %p4622_p0, %p4616_p9 }
 0x9eb   : > { %v3077_v45 = vpop.f32.mrf.mxu0  ;;  %v3148_v46 = vpop.f32.mrf.mxu1 }
 0x9ec   : > { %v3078_v44 = vadd.f32 1e-06, %v3077_v45  ;;  %v3149_v47 = vadd.f32 1e-06, %v3148_v46 }
 0x9ed   : > { %v3079_v48 = vpop.f32.mrf.mxu0  ;;  %v3150_v49 = vpop.f32.mrf.mxu1 }
 0x9ee   : > { %4341 = vlog2.f32 %v3078_v44  ;;  %v3080_v50 = vadd.f32 1e-06, %v3079_v48  ;;  %v3151_v51 = vadd.f32 1e-06, %v3150_v49 }
 0x9ef   : > { %4343 = vlog2.f32 %v3149_v47 }
 0x9f0   : > { %4345 = vlog2.f32 %v3080_v50 }
 0x9f1   : > { %4347 = vlog2.f32 %v3151_v51 }
 0x9fb   : > { %v4342_v52 = vpop.eup %4341 }
 0x9fc   : > { %v4344_v53 = vpop.eup %4343  ;;  %v3154_v54 = vmul.f32 0.6931472, %v4342_v52 }
 0x9fd   : > { %v4346_v55 = vpop.eup %4345  ;;  %v3158_v57 = vmul.f32 0.6931472, %v4344_v53 }
 0x9fe   : > { %v4348_v59 = vpop.eup %4347  ;;  %3161 = vst [vmem:[%s5124_s14] sm:$0xff] %v3154_v54  ;;  %v3156_v60 = vmul.f32 0.6931472, %v4346_v55  ;;  %v3169_v62 = vmul.f32 %v3165_v35, %v3154_v54 }
 0x9ff   : > { %3163 = vst [vmem:[%s5124_s14 + $0x10] sm:$0xff] %v3158_v57  ;;  %v3160_v61 = vmul.f32 0.6931472, %v4348_v59  ;;  %v3171_v0 = vmul.f32 %v3167_v58, %v3158_v57 }
 0xa00   : > { %3162 = vst [vmem:[%s5124_s14 + $0x8] sm:$0xff] %v3156_v60  ;;  %v3170_v63 = vmul.f32 %v3166_v56, %v3156_v60 }
 0xa01   : > { %3164 = vst [vmem:[%s5124_s14 + $0x18] sm:$0xff] %v3160_v61  ;;  %v3172_v4 = vmul.f32 %v3168_v1, %v3160_v61 }
 0xa02   : > { %v3173_v3 = vadd.f32 %v3170_v63, %v3169_v62 }
 0xa04   : > { %v3174_v5 = vadd.f32 %v3173_v3, %v3171_v0 }
 0xa06   : > { %v3175_v6 = vadd.f32 %v3174_v5, %v3172_v4 }
 0xa08   : > { %3176 = vadd.xlane.f32.xlu0 %v3175_v6 }
 0xa09   : > { %4626 = shalt.err (!%p4623_p13)
}
 0xa0a   : > { %s5817_s5 = sld [smem:[#allocation48_spill]]  ;;  %s3670_s8 = scalar_lea.smem [#allocation21], %s4713_s28 }
 0xa0b   : > { %s5818_s0 = sld [smem:[#allocation49_spill]]  ;;  %s3671_s20 = scalar_lea.smem %s3670_s8, 4294967295 [#allocation21] }
 0xa10   : > { %4004 = dma.vmem_to_hbm [thread:$0]  (%p4060_p5), %s3207_s27, 128, %s5817_s5, [#allocation5]  }
 0xa11   : > { %s3223_s11 = sshll.u32 %s5818_s0, 4  ;;  %s3224_s11 = int_to_ptr.vmem [resolvable:$true] %s3223_s11 }
 0xa12   : > { %s4637_s27 = scalar_lea.vmem %s3224_s11, 16  ;;  %p4644_p7 = scmp.lt.s32.totalorder %s3224_s11, %s3224_s11 }
 0xa13   : > { %p4638_p6 = scmp.ne.s32.totalorder %s3224_s11, %s4637_s27  ;;  %p4645_p2 = scmp.lt.s32.totalorder %s4637_s27, %s4637_s27 }
 0xa15   : > { %p4639_p8 = pnand %p4638_p6, %p4060_p5  ;;  %p4646_p11 = por %p4645_p2, %p4644_p7 }
 0xa17   : > { %p4640_p10 = pneg %p4639_p8 }
 0xa19   : > { %p4647_p12 = pnand %p4646_p11, %p4640_p10 }
 0xa91   : > { %v3177_v7 = vpop.xlane.xlu0 %3176 }
 0xa92   : > { %v3178_v8 = vrot.slane %v3177_v7, 4 }
 0xa94   : > { %v3179_v9 = vadd.f32 %v3178_v8, %v3177_v7 }
 0xa96   : > { %v3180_v10 = vrot.slane %v3179_v9, 2 }
 0xa98   : > { %v3181_v11 = vadd.f32 %v3180_v10, %v3179_v9 }
 0xa9a   : > { %v3182_v2 = vrot.slane %v3181_v11, 1 }
 0xa9c   : > { %v3183_v12 = vadd.f32 %v3182_v2, %v3181_v11 }
 0xa9e   : > { %3965 = vpush %v3183_v12 }
 0xacf   : > { %s3966_s4 = spop %3965 }
 0xad0   : > { %s3185_s2 = ssub.f32 0.0, %s3966_s4 }
 0xad2   : > { %s3186_s1 = smul.f32 0.125, %s3185_s2 }
 0xad4   : > { %3188 = sst [smem:[%s3671_s20]] %s3186_s1 }
 0xad5   : > { %4650 = shalt.err (!%p4647_p12)
}
 0xad6   : > { %s4736_s23 = smov [#allocation21]  }
 0xad7   : > { %4006 = dma.smem_to_vmem (%p4060_p5), %s4736_s23, 16, %s3224_s11, [#allocation6]  }
 0xad8   : > { %4692 = dma.done.wait (%p4060_p5), [#allocation5], 128  }
 0xad9   : > { %4694 = vsyncadd (%p4060_p5), [#allocation5], 4294967168 }
 0xada   : > { %4696 = dma.done.wait (%p4060_p5), [#allocation6], 16  }
 0xadb   : > { %4698 = vsyncadd (%p4060_p5), [#allocation6], 4294967280 }
 0xadc   : > { %3235 = sfence }
 0xadd PF: > { %s5819_s28 = sld [smem:[#allocation30_spill]]  ;;  %s5821_s27 = smov %s4705_s3 }
 0xade   : > { %s5820_s14 = sld [smem:[#allocation31_spill]]  ;;  %s5822_s3 = smov %s4709_s7 }
 0xae3   : > { %p41_p3 = scmp.ge.s32.totalorder %s5819_s28, 5  }
 0xae4   : > { %s5823_s7 = smov %s5820_s14 }
 0xae5   :  { %43 = sbr.rel (!%p41_p3) target bundleno = 27 (0x1b), region = 233 }
 0xaea   :  { %3257 = vsyncpa [#allocation4], 1 }
 0xaeb   :  { %3259 = vsyncpa [#allocation4 + $0x1], 1 }
 0xaec   :  { %3260 = vsyncpa [#allocation8], 1 }
 0xaed   :  { %3261 = vsyncpa [#allocation11], 1 }
 0xaee   :  { %3262 = vsyncpa [#allocation14], 1 }
 0xaef   :  { %3263 = vsyncpa [#allocation17], 1 }
 0xaf0   :  { %3264 = vsyncpa [#allocation5], 1 }
 0xaf1   :  { %3266 = vsyncpa [#allocation5 + $0x1], 1 }
 0xaf2   :  { %3267 = vsyncpa [#allocation6], 1 }
 0xaf3   :  { %3269 = vsyncpa [#allocation6 + $0x1], 1 }

</bundles_post_ra>
